<compile_context>
chip_gen: v5e
topology: v5e:2x2
jax: 0.10.0
libtpu: 0.0.40
codegen_flags: <defaults>
</compile_context>

<pallas_src>
import functools

import jax
import jax.numpy as jnp
from jax import lax
from jax.experimental import pallas as pl
from jax.experimental.pallas import tpu as pltpu


# ----------------------------- Kernel 1: stats ------------------------------
def _stats_kernel(x_ref, sums_ref, acc_s, acc_q):
    i = pl.program_id(1)                      # reduction axis ("arbitrary")

    @pl.when(i == 0)
    def _():
        acc_s[...] = jnp.zeros_like(acc_s)
        acc_q[...] = jnp.zeros_like(acc_q)

    x = x_ref[...].astype(jnp.float32)        # (tm, L)
    tm, L = x.shape
    if tm % 8 == 0:
        # Full-vreg accumulation: fold the row tile onto an (8, L) accumulator.
        acc_s[...] += x.reshape(tm // 8, 8, L).sum(axis=0)
        acc_q[...] += (x * x).reshape(tm // 8, 8, L).sum(axis=0)
    else:
        acc_s[0, :] += x.sum(axis=0)
        acc_q[0, :] += (x * x).sum(axis=0)

    @pl.when(i == pl.num_programs(1) - 1)
    def _():
        s = acc_s[...].sum(axis=0, keepdims=True)              # (1, L)
        q = acc_q[...].sum(axis=0, keepdims=True)              # (1, L)
        sums_ref[...] = jnp.concatenate([s, q], axis=0)[None]  # (1, 2, L)


def _compute_sums(x2d, *, tm, num_shards):
    rows, L = x2d.shape
    n_tiles = rows // tm
    steps = n_tiles // num_shards
    return pl.pallas_call(
        _stats_kernel,
        out_shape=jax.ShapeDtypeStruct((num_shards, 2, L), jnp.float32),
        grid_spec=pltpu.PrefetchScalarGridSpec(
            num_scalar_prefetch=0,
            grid=(num_shards, steps),
            in_specs=[pl.BlockSpec((tm, L), lambda s, i: (s * steps + i, 0))],
            out_specs=pl.BlockSpec((1, 2, L), lambda s, i: (s, 0, 0)),
            scratch_shapes=[pltpu.VMEM((8, L), jnp.float32),
                            pltpu.VMEM((8, L), jnp.float32)],
        ),
        compiler_params=pltpu.CompilerParams(
            dimension_semantics=("parallel", "arbitrary")),
    )(x2d)


# --------------------------- Kernel 2: normalize ----------------------------
def _bn_kernel(x_ref, scale_ref, bias_ref, o_ref):
    x = x_ref[...].astype(jnp.float32)
    o_ref[...] = (x * scale_ref[...] + bias_ref[...]).astype(o_ref.dtype)


def _normalize(x2d, scale_t, bias_t, *, tm):
    rows, L = x2d.shape
    grid = (rows // tm,)
    param_spec = pl.BlockSpec((1, L), lambda i: (0, 0))
    return pl.pallas_call(
        _bn_kernel,
        out_shape=jax.ShapeDtypeStruct((rows, L), x2d.dtype),
        grid_spec=pltpu.PrefetchScalarGridSpec(
            num_scalar_prefetch=0,
            grid=grid,
            in_specs=[pl.BlockSpec((tm, L), lambda i: (i, 0)),
                      param_spec, param_spec],
            out_specs=pl.BlockSpec((tm, L), lambda i: (i, 0)),
        ),
        compiler_params=pltpu.CompilerParams(
            dimension_semantics=("parallel",)),
    )(x2d, scale_t, bias_t)


# --------------------------------- helpers ----------------------------------
def _pick_tm(rows, tm_max):
    """Largest row tile <= tm_max that divides rows (multiple of 8 if tiled)."""
    if rows <= tm_max:
        return rows
    t = (tm_max // 8) * 8
    while t >= 8:
        if rows % t == 0:
            return t
        t -= 8
    return rows       # fallback: single (possibly large) tile


# ------------------------------- Public wrapper ------------------------------
def batch_norm_adapter_1d(feat, gamma, beta, *, eps=1e-5, tm_max=1024):
    """feat: (b, x, c) float32. Training-mode BatchNorm1d over channel c."""
    b, sx, c = feat.shape
    M = b * sx

    # Lane-dense view: fold R consecutive rows into the lane axis (R*C == 128).
    if 128 % c == 0 and M % (128 // c) == 0:
        R = 128 // c
    else:
        R = 1                              # fallback: plain channels-last view
    L = R * c
    rows = M // R
    x2d = feat.reshape(rows, L)

    tm = _pick_tm(rows, tm_max)
    n_tiles = rows // tm
    num_shards = 2 if (n_tiles % 2 == 0 and n_tiles >= 2) else 1

    # ---- pass 1: per-lane sum / sum-of-squares (in-kernel reduction) ----
    sums = _compute_sums(x2d, tm=tm, num_shards=num_shards)   # (NS, 2, L)
    sums = sums.sum(axis=0)                                   # combine shards
    ssum = sums[0].reshape(R, c).sum(axis=0)                  # fold replicas -> (c,)
    sqsum = sums[1].reshape(R, c).sum(axis=0)

    mean = ssum / M
    var = jnp.maximum(sqsum / M - mean * mean, 0.0)           # biased var, clamped
    scale = gamma.astype(jnp.float32) * lax.rsqrt(var + eps)
    bias = beta.astype(jnp.float32) - mean * scale
    scale_t = jnp.tile(scale, R).reshape(1, L)
    bias_t = jnp.tile(bias, R).reshape(1, L)
    # TODO(synk): running_mean/running_var momentum update is stateful module
    # bookkeeping and does not affect the training-mode forward output; omitted.

    # ---- pass 2: y = x * scale + bias ----
    out2d = _normalize(x2d, scale_t, bias_t, tm=tm)
    return out2d.reshape(b, sx, c)


def _reference(feat, gamma, beta, eps=1e-5):
    m = jnp.mean(feat, axis=(0, 1), keepdims=True)
    v = jnp.mean((feat - m) ** 2, axis=(0, 1), keepdims=True)
    return (feat - m) * lax.rsqrt(v + eps) * gamma + beta


if __name__ == "__main__":
    key = jax.random.PRNGKey(0)
    k1, k2, k3 = jax.random.split(key, 3)

    b, sx, c = 4, 8192, 8                     # M = 32768 rows, C = 8 channels
    feat = jax.random.normal(k1, (b, sx, c), dtype=jnp.float32)

    # Deterministic affine params (PyTorch default would be ones/zeros;
    # random values exercise the same formula).
    gamma = 1.0 + 0.1 * jax.random.normal(k2, (c,), dtype=jnp.float32)
    beta = 0.1 * jax.random.normal(k3, (c,), dtype=jnp.float32)

    fn = jax.jit(functools.partial(batch_norm_adapter_1d, eps=1e-5, tm_max=1024))
    out = jax.block_until_ready(fn(feat, gamma, beta))

    ref = _reference(feat, gamma, beta, eps=1e-5)
    assert out.shape == feat.shape
    assert jnp.allclose(out, ref, atol=2e-4, rtol=2e-4), "mismatch vs reference"

    print("KERNEL_OK")
</pallas_src>

<mosaic_0001>
module attributes {stable_mosaic.version = 11 : i64} {
  func.func @_stats_kernel(%arg0: i32, %arg1: i32, %arg2: memref<1024x128xf32, #tpu.memory_space<vmem>>, %arg3: memref<1x2x128xf32, #tpu.memory_space<vmem>>, %arg4: memref<8x128xf32, #tpu.memory_space<vmem>>, %arg5: memref<8x128xf32, #tpu.memory_space<vmem>>) attributes {dimension_semantics = [#tpu.dimension_semantics<parallel>, #tpu.dimension_semantics<arbitrary>], iteration_bounds = array<i64: 2, 1>, scalar_prefetch = 0 : i64, scratch_operands = 2 : i64, tpu.core_type = #tpu.core_type<tc>, window_params = [{transform_indices = @transform_0, window_bounds = array<i64: 1024, 128>}, {transform_indices = @transform_1, window_bounds = array<i64: 1, 2, 128>}]} {
    %c0_i32 = arith.constant 0 : i32
    %0 = arith.cmpi eq, %arg1, %c0_i32 : i32
    %1 = arith.extui %0 : i1 to i32
    %c0_i32_0 = arith.constant 0 : i32
    %2 = arith.cmpi ne, %1, %c0_i32_0 : i32
    scf.if %2 {
      %cst_13 = arith.constant 0.000000e+00 : f32
      %18 = vector.broadcast %cst_13 : f32 to vector<8x128xf32>
      %c0_14 = arith.constant 0 : index
      %c0_15 = arith.constant 0 : index
      %19 = vector.load %arg4[%c0_14, %c0_15] : memref<8x128xf32, #tpu.memory_space<vmem>>, vector<8x128xf32>
      tpu.vector_store %arg4[%c0_14, %c0_15], %18 {strides = array<i32>} : memref<8x128xf32, #tpu.memory_space<vmem>>, vector<8x128xf32>,
      %cst_16 = arith.constant 0.000000e+00 : f32
      %20 = vector.broadcast %cst_16 : f32 to vector<8x128xf32>
      %c0_17 = arith.constant 0 : index
      %c0_18 = arith.constant 0 : index
      %21 = vector.load %arg5[%c0_17, %c0_18] : memref<8x128xf32, #tpu.memory_space<vmem>>, vector<8x128xf32>
      tpu.vector_store %arg5[%c0_17, %c0_18], %20 {strides = array<i32>} : memref<8x128xf32, #tpu.memory_space<vmem>>, vector<8x128xf32>,
    } else {
    }
    %c0 = arith.constant 0 : index
    %c0_1 = arith.constant 0 : index
    %3 = vector.load %arg2[%c0, %c0_1] : memref<1024x128xf32, #tpu.memory_space<vmem>>, vector<1024x128xf32>
    %c0_2 = arith.constant 0 : index
    %c0_3 = arith.constant 0 : index
    %4 = vector.load %arg4[%c0_2, %c0_3] : memref<8x128xf32, #tpu.memory_space<vmem>>, vector<8x128xf32>
    %5 = vector.shape_cast %3 : vector<1024x128xf32> to vector<128x8x128xf32>
    %cst = arith.constant dense<0.000000e+00> : vector<8x128xf32>
    %6 = vector.multi_reduction <add>, %5, %cst [0] : vector<128x8x128xf32> to vector<8x128xf32>
    %7 = arith.addf %4, %6 : vector<8x128xf32>
    %c0_4 = arith.constant 0 : index
    %c0_5 = arith.constant 0 : index
    %8 = vector.load %arg4[%c0_4, %c0_5] : memref<8x128xf32, #tpu.memory_space<vmem>>, vector<8x128xf32>
    tpu.vector_store %arg4[%c0_4, %c0_5], %7 {strides = array<i32>} : memref<8x128xf32, #tpu.memory_space<vmem>>, vector<8x128xf32>,
    %c0_6 = arith.constant 0 : index
    %c0_7 = arith.constant 0 : index
    %9 = vector.load %arg5[%c0_6, %c0_7] : memref<8x128xf32, #tpu.memory_space<vmem>>, vector<8x128xf32>
    %10 = arith.mulf %3, %3 : vector<1024x128xf32>
    %11 = vector.shape_cast %10 : vector<1024x128xf32> to vector<128x8x128xf32>
    %cst_8 = arith.constant dense<0.000000e+00> : vector<8x128xf32>
    %12 = vector.multi_reduction <add>, %11, %cst_8 [0] : vector<128x8x128xf32> to vector<8x128xf32>
    %13 = arith.addf %9, %12 : vector<8x128xf32>
    %c0_9 = arith.constant 0 : index
    %c0_10 = arith.constant 0 : index
    %14 = vector.load %arg5[%c0_9, %c0_10] : memref<8x128xf32, #tpu.memory_space<vmem>>, vector<8x128xf32>
    tpu.vector_store %arg5[%c0_9, %c0_10], %13 {strides = array<i32>} : memref<8x128xf32, #tpu.memory_space<vmem>>, vector<8x128xf32>,
    %c0_i32_11 = arith.constant 0 : i32
    %15 = arith.cmpi eq, %arg1, %c0_i32_11 : i32
    %16 = arith.extui %15 : i1 to i32
    %c0_i32_12 = arith.constant 0 : i32
    %17 = arith.cmpi ne, %16, %c0_i32_12 : i32
    scf.if %17 {
      %c0_13 = arith.constant 0 : index
      %c0_14 = arith.constant 0 : index
      %18 = vector.load %arg4[%c0_13, %c0_14] : memref<8x128xf32, #tpu.memory_space<vmem>>, vector<8x128xf32>
      %cst_15 = arith.constant dense<0.000000e+00> : vector<128xf32>
      %19 = vector.multi_reduction <add>, %18, %cst_15 [0] : vector<8x128xf32> to vector<128xf32>
      %20 = vector.shape_cast %19 : vector<128xf32> to vector<1x128xf32>
      %c0_16 = arith.constant 0 : index
      %c0_17 = arith.constant 0 : index
      %21 = vector.load %arg5[%c0_16, %c0_17] : memref<8x128xf32, #tpu.memory_space<vmem>>, vector<8x128xf32>
      %cst_18 = arith.constant dense<0.000000e+00> : vector<128xf32>
      %22 = vector.multi_reduction <add>, %21, %cst_18 [0] : vector<8x128xf32> to vector<128xf32>
      %23 = vector.shape_cast %22 : vector<128xf32> to vector<1x128xf32>
      %24 = tpu.concatenate %20, %23 in 0 : vector<1x128xf32>, vector<1x128xf32> -> vector<2x128xf32>
      %25 = vector.shape_cast %24 : vector<2x128xf32> to vector<1x2x128xf32>
      %c0_19 = arith.constant 0 : index
      %c0_20 = arith.constant 0 : index
      %c0_21 = arith.constant 0 : index
      %26 = vector.load %arg3[%c0_19, %c0_20, %c0_21] : memref<1x2x128xf32, #tpu.memory_space<vmem>>, vector<1x2x128xf32>
      tpu.vector_store %arg3[%c0_19, %c0_20, %c0_21], %25 {strides = array<i32>} : memref<1x2x128xf32, #tpu.memory_space<vmem>>, vector<1x2x128xf32>,
    } else {
    }
    return
  }
  func.func @transform_0(%arg0: i32, %arg1: i32) -> (i32, i32) {
    %c1_i32 = arith.constant 1 : i32
    %0 = arith.muli %arg0, %c1_i32 : i32
    %1 = arith.addi %0, %arg1 : i32
    %c0_i32 = arith.constant 0 : i32
    %c0_i32_0 = arith.constant 0 : i32
    return %1, %c0_i32 : i32, i32
  }
  func.func @transform_1(%arg0: i32, %arg1: i32) -> (i32, i32, i32) {
    %c0_i32 = arith.constant 0 : i32
    %c0_i32_0 = arith.constant 0 : i32
    %c0_i32_1 = arith.constant 0 : i32
    return %arg0, %c0_i32, %c0_i32_0 : i32, i32, i32
  }
}

module attributes {stable_mosaic.version = 11 : i64} {
  func.func @_bn_kernel(%arg0: i32, %arg1: memref<1024x128xf32, #tpu.memory_space<vmem>>, %arg2: memref<1x128xf32, #tpu.memory_space<vmem>>, %arg3: memref<1x128xf32, #tpu.memory_space<vmem>>, %arg4: memref<1024x128xf32, #tpu.memory_space<vmem>>) attributes {dimension_semantics = [#tpu.dimension_semantics<parallel>], iteration_bounds = array<i64: 2>, scalar_prefetch = 0 : i64, scratch_operands = 0 : i64, tpu.core_type = #tpu.core_type<tc>, window_params = [{transform_indices = @transform_0, window_bounds = array<i64: 1024, 128>}, {pipeline_mode = #tpu.pipeline_mode<synchronous>, transform_indices = @transform_1, window_bounds = array<i64: 1, 128>}, {pipeline_mode = #tpu.pipeline_mode<synchronous>, transform_indices = @transform_2, window_bounds = array<i64: 1, 128>}, {transform_indices = @transform_3, window_bounds = array<i64: 1024, 128>}]} {
    %c0 = arith.constant 0 : index
    %c0_0 = arith.constant 0 : index
    %0 = vector.load %arg1[%c0, %c0_0] : memref<1024x128xf32, #tpu.memory_space<vmem>>, vector<1024x128xf32>
    %c0_1 = arith.constant 0 : index
    %c0_2 = arith.constant 0 : index
    %1 = vector.load %arg2[%c0_1, %c0_2] : memref<1x128xf32, #tpu.memory_space<vmem>>, vector<1x128xf32>
    %2 = vector.broadcast %1 : vector<1x128xf32> to vector<1024x128xf32>
    %3 = arith.mulf %0, %2 : vector<1024x128xf32>
    %c0_3 = arith.constant 0 : index
    %c0_4 = arith.constant 0 : index
    %4 = vector.load %arg3[%c0_3, %c0_4] : memref<1x128xf32, #tpu.memory_space<vmem>>, vector<1x128xf32>
    %5 = vector.broadcast %4 : vector<1x128xf32> to vector<1024x128xf32>
    %6 = arith.addf %3, %5 : vector<1024x128xf32>
    %c0_5 = arith.constant 0 : index
    %c0_6 = arith.constant 0 : index
    %7 = vector.load %arg4[%c0_5, %c0_6] : memref<1024x128xf32, #tpu.memory_space<vmem>>, vector<1024x128xf32>
    tpu.vector_store %arg4[%c0_5, %c0_6], %6 {strides = array<i32>} : memref<1024x128xf32, #tpu.memory_space<vmem>>, vector<1024x128xf32>,
    return
  }
  func.func @transform_0(%arg0: i32) -> (i32, i32) {
    %c0_i32 = arith.constant 0 : i32
    %c0_i32_0 = arith.constant 0 : i32
    return %arg0, %c0_i32 : i32, i32
  }
  func.func @transform_1(%arg0: i32) -> (i32, i32) {
    %c0_i32 = arith.constant 0 : i32
    %c0_i32_0 = arith.constant 0 : i32
    %c0_i32_1 = arith.constant 0 : i32
    return %c0_i32, %c0_i32_0 : i32, i32
  }
  func.func @transform_2(%arg0: i32) -> (i32, i32) {
    %c0_i32 = arith.constant 0 : i32
    %c0_i32_0 = arith.constant 0 : i32
    %c0_i32_1 = arith.constant 0 : i32
    return %c0_i32, %c0_i32_0 : i32, i32
  }
  func.func @transform_3(%arg0: i32) -> (i32, i32) {
    %c0_i32 = arith.constant 0 : i32
    %c0_i32_0 = arith.constant 0 : i32
    return %arg0, %c0_i32 : i32, i32
  }
}

</mosaic_0001>

<bundles_post_ra>
// kernel: squeeze.2
= control target key start
LH: loop header
LB: loop body
LE: loop exit
PB: predicated region body
PF: predicated region fallthrough
CT: control target
= control target key end

     0   :  { %s130_s8 = smov 120   ;;  %s131_s9 = smov 88   ;;  %vm7_vm0 = vcmask 64512   ;;  %s221_s0 = inlined_call_operand.vmem [shape: f32[128], index: 0, kind: input, shape index: {}]   ;;  %s222_s1 = inlined_call_operand.vmem [shape: f32[16,8], index: 1, kind: output, shape index: {}]  }
   0x1   :  { %v4_v0 = vld [vmem:[%s221_s0] sm:$0x1]  ;;  %s129_s0 = smov 104   ;;  %s132_s10 = smov 96  }
   0x2   :  { %5 = vst [vmem:[#allocation0] sm:$0x1] %v4_v0  ;;  %s133_s11 = smov 112   ;;  %s134_s12 = smov 80  }
   0x3   :  { %s135_s13 = smov 64   ;;  %s136_s14 = smov 72  }
   0x4   :  { %s137_s15 = smov 56   ;;  %s138_s16 = smov 40  }
   0x5   :  { %s139_s17 = smov 48   ;;  %s140_s18 = smov 32  }
   0x6   :  { %s141_s19 = smov 16   ;;  %s142_s20 = smov 24  }
   0x7   :  { %s143_s21 = smov 8  }
   0x9   :  { %v21_v1 = vld [vmem:[#allocation0] sm:$0x1]  }
   0xa   :  { %v9_v2 = vld [vmem:[#allocation0] sm:$0x1]   ;;  %22 = vrot.lane.b32.xlu1 %v21_v1, %s129_s0 }
   0xb   :  { %10 = vrot.lane.b32.xlu0 %v9_v2, %s130_s8  ;;  %v33_v3 = vld [vmem:[#allocation0] sm:$0x1]  }
   0xc   :  { %34 = vrot.lane.b32.xlu2 %v33_v3, %s131_s9  ;;  %v27_v4 = vld [vmem:[#allocation0] sm:$0x1]  }
   0xd   :  { %v15_v5 = vld [vmem:[#allocation0] sm:$0x1]  }
   0xe   :  { %v39_v6 = vld [vmem:[#allocation0] sm:$0x1]  }
   0xf   :  { %v51_v7 = vld [vmem:[#allocation0] sm:$0x1]  }
  0x10   :  { %v45_v8 = vld [vmem:[#allocation0] sm:$0x1]  }
  0x11   :  { %v57_v9 = vld [vmem:[#allocation0] sm:$0x1]  }
  0x12   :  { %28 = vrot.lane.b32.xlu1 %v27_v4, %s132_s10  ;;  %v69_v10 = vld [vmem:[#allocation0] sm:$0x1]  }
  0x13   :  { %16 = vrot.lane.b32.xlu0 %v15_v5, %s133_s11  ;;  %v63_v11 = vld [vmem:[#allocation0] sm:$0x1]  }
  0x14   :  { %40 = vrot.lane.b32.xlu2 %v39_v6, %s134_s12  ;;  %v75_v12 = vld [vmem:[#allocation0] sm:$0x1]  }
  0x15   :  { %v87_v13 = vld [vmem:[#allocation0] sm:$0x1]  }
  0x16   :  { %v81_v14 = vld [vmem:[#allocation0] sm:$0x1]  }
  0x17   :  { %v93_v15 = vld [vmem:[#allocation0] sm:$0x1]  }
  0x18   :  { %v6_v21 = vld [vmem:[#allocation0] sm:$0x1]  }
  0x19   :  { %8 = vst.msk [vmem:[%s222_s1] sm:$0x1] %vm7_vm0, %v6_v21  }
  0x1a   :  { %52 = vrot.lane.b32.xlu1 %v51_v7, %s135_s13 }
  0x1b   :  { %46 = vrot.lane.b32.xlu0 %v45_v8, %s136_s14 }
  0x1c   :  { %58 = vrot.lane.b32.xlu2 %v57_v9, %s137_s15 }
  0x22   :  { %70 = vrot.lane.b32.xlu1 %v69_v10, %s138_s16 }
  0x23   :  { %64 = vrot.lane.b32.xlu0 %v63_v11, %s139_s17 }
  0x24   :  { %76 = vrot.lane.b32.xlu2 %v75_v12, %s140_s18 }
  0x2a   :  { %88 = vrot.lane.b32.xlu1 %v87_v13, %s141_s19 }
  0x2b   :  { %82 = vrot.lane.b32.xlu0 %v81_v14, %s142_s20 }
  0x2c   :  { %94 = vrot.lane.b32.xlu2 %v93_v15, %s143_s21 }
  0x66   :  { %v35_v16 = vpop.permute.xlu2 %34  }
  0x67   :  { %103 = vst.msk [vmem:[%s222_s1 + $0x5] sm:$0x1] %vm7_vm0, %v35_v16  }
  0x6e   :  { %v41_v17 = vpop.permute.xlu2 %40  }
  0x6f   :  { %104 = vst.msk [vmem:[%s222_s1 + $0x6] sm:$0x1] %vm7_vm0, %v41_v17  }
  0x76   :  { %v59_v18 = vpop.permute.xlu2 %58  }
  0x77   :  { %107 = vst.msk [vmem:[%s222_s1 + $0x9] sm:$0x1] %vm7_vm0, %v59_v18  }
  0x7c   :  { %v23_v19 = vpop.permute.xlu1 %22  }
  0x7d   :  { %v11_v20 = vpop.permute.xlu0 %10   ;;  %101 = vst.msk [vmem:[%s222_s1 + $0x3] sm:$0x1] %vm7_vm0, %v23_v19  }
  0x7e   :  { %99 = vst.msk [vmem:[%s222_s1 + $0x1] sm:$0x1] %vm7_vm0, %v11_v20   ;;  %v77_v22 = vpop.permute.xlu2 %76  }
  0x7f   :  { %110 = vst.msk [vmem:[%s222_s1 + $0xc] sm:$0x1] %vm7_vm0, %v77_v22  }
  0x84   :  { %v29_v23 = vpop.permute.xlu1 %28  }
  0x85   :  { %v17_v24 = vpop.permute.xlu0 %16   ;;  %102 = vst.msk [vmem:[%s222_s1 + $0x4] sm:$0x1] %vm7_vm0, %v29_v23  }
  0x86   :  { %100 = vst.msk [vmem:[%s222_s1 + $0x2] sm:$0x1] %vm7_vm0, %v17_v24   ;;  %v95_v25 = vpop.permute.xlu2 %94  }
  0x87   :  { %113 = vst.msk [vmem:[%s222_s1 + $0xf] sm:$0x1] %vm7_vm0, %v95_v25  }
  0x8c   :  { %v53_v26 = vpop.permute.xlu1 %52  }
  0x8d   :  { %v47_v27 = vpop.permute.xlu0 %46   ;;  %106 = vst.msk [vmem:[%s222_s1 + $0x8] sm:$0x1] %vm7_vm0, %v53_v26  }
  0x8e   :  { %105 = vst.msk [vmem:[%s222_s1 + $0x7] sm:$0x1] %vm7_vm0, %v47_v27  }
  0x94   :  { %v71_v28 = vpop.permute.xlu1 %70  }
  0x95   :  { %v65_v29 = vpop.permute.xlu0 %64   ;;  %109 = vst.msk [vmem:[%s222_s1 + $0xb] sm:$0x1] %vm7_vm0, %v71_v28  }
  0x96   :  { %108 = vst.msk [vmem:[%s222_s1 + $0xa] sm:$0x1] %vm7_vm0, %v65_v29  }
  0x9c   :  { %v89_v30 = vpop.permute.xlu1 %88  }
  0x9d   :  { %v83_v31 = vpop.permute.xlu0 %82   ;;  %112 = vst.msk [vmem:[%s222_s1 + $0xe] sm:$0x1] %vm7_vm0, %v89_v30  }
  0x9e   :  { %111 = vst.msk [vmem:[%s222_s1 + $0xd] sm:$0x1] %vm7_vm0, %v83_v31  }

// kernel: tile.18
= control target key start
LH: loop header
LB: loop body
LE: loop exit
PB: predicated region body
PF: predicated region fallthrough
CT: control target
= control target key end

     0   :  { %s28_s0 = inlined_call_operand.vmem [shape: f32[8], index: 0, kind: input, shape index: {}]   ;;  %s29_s1 = inlined_call_operand.vmem [shape: f32[16,8], index: 1, kind: output, shape index: {}]  }
   0x1   :  { %v4_v0 = vld [vmem:[%s28_s0] ss:$0 sm:$0xff] }
   0x2   :  { %5 = vst [vmem:[%s29_s1] sm:$0xff] %v4_v0 }
   0x3   :  { %8 = vst [vmem:[%s29_s1 + $0x8] sm:$0xff] %v4_v0 }

// kernel: tile.19
= control target key start
LH: loop header
LB: loop body
LE: loop exit
PB: predicated region body
PF: predicated region fallthrough
CT: control target
= control target key end

     0   :  { %s131_s10 = smov 120   ;;  %s132_s11 = smov 104   ;;  %vm3_vm0 = vcmask 64512   ;;  %vm9_vm1 = vcmask 1048512   ;;  %vm15_vm2 = vcmask 982912   ;;  %vm21_vm3 = vcmask 917312   ;;  %s207_s0 = inlined_call_operand.vmem [shape: f32[16,8], index: 0, kind: input, shape index: {}]   ;;  %s208_s1 = inlined_call_operand.vmem [shape: f32[1,128], index: 1, kind: output, shape index: {}]  }
   0x1   :  { %v101_v0 = vld [vmem:[%s207_s0 + $0xf] sm:$0x1]   ;;  %v103_v1 = vld [vmem:[%s207_s0 + $0xd] sm:$0x1]   ;;  %v105_v2 = vld [vmem:[%s207_s0 + $0xb] sm:$0x1]  }
   0x2   :  { %7 = vrot.lane.b32.xlu0 %v101_v0, %s131_s10  ;;  %19 = vrot.lane.b32.xlu1 %v103_v1, %s132_s11  ;;  %s133_s14 = smov 88   ;;  %v102_v3 = vld [vmem:[%s207_s0 + $0xe] sm:$0x1]   ;;  %v104_v4 = vld [vmem:[%s207_s0 + $0xc] sm:$0x1]   ;;  %s134_s19 = smov 112  }
   0x3   :  { %31 = vrot.lane.b32.xlu2 %v105_v2, %s133_s14  ;;  %s135_s20 = smov 96   ;;  %v106_v5 = vld [vmem:[%s207_s0 + $0xa] sm:$0x1]   ;;  %s136_s23 = smov 80   ;;  %v107_v6 = vld [vmem:[%s207_s0 + $0x9] sm:$0x1]  }
   0x4   :  { %v108_v7 = vld [vmem:[%s207_s0 + $0x8] sm:$0x1]   ;;  %s137_s28 = smov 72   ;;  %s138_s29 = smov 64   ;;  %v109_v8 = vld [vmem:[%s207_s0 + $0x7] sm:$0x1]  }
   0x5   :  { %s139_s3 = smov 56   ;;  %v110_v9 = vld [vmem:[%s207_s0 + $0x6] sm:$0x1]   ;;  %v111_v10 = vld [vmem:[%s207_s0 + $0x5] sm:$0x1]   ;;  %s140_s8 = smov 48  }
   0x6   :  { %s141_s9 = smov 40   ;;  %v112_v11 = vld [vmem:[%s207_s0 + $0x4] sm:$0x1]   ;;  %s142_s12 = smov 32   ;;  %v113_v12 = vld [vmem:[%s207_s0 + $0x3] sm:$0x1]  }
   0x7   :  { %v114_v13 = vld [vmem:[%s207_s0 + $0x2] sm:$0x1]   ;;  %s143_s17 = smov 24   ;;  %s144_s18 = smov 16   ;;  %v115_v14 = vld [vmem:[%s207_s0 + $0x1] sm:$0x1]  }
   0x8   :  { %s145_s21 = smov 8   ;;  %v2_v15 = vld [vmem:[%s207_s0] sm:$0x1]   ;;  %vm27_vm4 = vcmask 851712   ;;  %vm33_vm5 = vcmask 786112   ;;  %vm39_vm6 = vcmask 720512  }
   0x9   :  { %4 = vst.msk [vmem:[#allocation0] sm:$0x1] %vm3_vm0, %v2_v15   ;;  %vm45_vm7 = vcmask 654912   ;;  %vm51_vm8 = vcmask 589312   ;;  %vm57_vm9 = vcmask 523712   ;;  %vm63_vm10 = vcmask 458112  }
   0xa   :  { %13 = vrot.lane.b32.xlu0 %v102_v3, %s134_s19  ;;  %25 = vrot.lane.b32.xlu1 %v104_v4, %s135_s20  ;;  %vm69_vm11 = vcmask 392512   ;;  %vm75_vm12 = vcmask 326912   ;;  %vm81_vm13 = vcmask 261312   ;;  %vm87_vm14 = vcmask 195712  }
   0xb   :  { %37 = vrot.lane.b32.xlu2 %v106_v5, %s136_s23  ;;  %vm93_vm15 = vcmask 130112  }
  0x12   :  { %43 = vrot.lane.b32.xlu0 %v107_v6, %s137_s28  ;;  %49 = vrot.lane.b32.xlu1 %v108_v7, %s138_s29 }
  0x13   :  { %55 = vrot.lane.b32.xlu2 %v109_v8, %s139_s3 }
  0x1a   :  { %61 = vrot.lane.b32.xlu0 %v110_v9, %s140_s8  ;;  %67 = vrot.lane.b32.xlu1 %v111_v10, %s141_s9 }
  0x1b   :  { %73 = vrot.lane.b32.xlu2 %v112_v11, %s142_s12 }
  0x22   :  { %79 = vrot.lane.b32.xlu0 %v113_v12, %s143_s17  ;;  %85 = vrot.lane.b32.xlu1 %v114_v13, %s144_s18 }
  0x23   :  { %91 = vrot.lane.b32.xlu2 %v115_v14, %s145_s21 }
  0x5d   :  { %v32_v16 = vpop.permute.xlu2 %31  }
  0x65   :  { %v38_v17 = vpop.permute.xlu2 %37  }
  0x6d   :  { %v56_v18 = vpop.permute.xlu2 %55  }
  0x74   :  { %v8_v19 = vpop.permute.xlu0 %7   ;;  %v20_v20 = vpop.permute.xlu1 %19  }
  0x75   :  { %10 = vst.msk [vmem:[#allocation0] sm:$0x1] %vm9_vm1, %v8_v19   ;;  %v74_v21 = vpop.permute.xlu2 %73  }
  0x7c   :  { %v14_v22 = vpop.permute.xlu0 %13   ;;  %v26_v23 = vpop.permute.xlu1 %25  }
  0x7d   :  { %16 = vst.msk [vmem:[#allocation0] sm:$0x1] %vm15_vm2, %v14_v22   ;;  %v92_v24 = vpop.permute.xlu2 %91  }
  0x7e   :  { %22 = vst.msk [vmem:[#allocation0] sm:$0x1] %vm21_vm3, %v20_v20  }
  0x7f   :  { %28 = vst.msk [vmem:[#allocation0] sm:$0x1] %vm27_vm4, %v26_v23  }
  0x80   :  { %34 = vst.msk [vmem:[#allocation0] sm:$0x1] %vm33_vm5, %v32_v16  }
  0x81   :  { %40 = vst.msk [vmem:[#allocation0] sm:$0x1] %vm39_vm6, %v38_v17  }
  0x84   :  { %v44_v25 = vpop.permute.xlu0 %43   ;;  %v50_v26 = vpop.permute.xlu1 %49  }
  0x85   :  { %46 = vst.msk [vmem:[#allocation0] sm:$0x1] %vm45_vm7, %v44_v25  }
  0x86   :  { %52 = vst.msk [vmem:[#allocation0] sm:$0x1] %vm51_vm8, %v50_v26  }
  0x87   :  { %58 = vst.msk [vmem:[#allocation0] sm:$0x1] %vm57_vm9, %v56_v18  }
  0x8c   :  { %v62_v27 = vpop.permute.xlu0 %61   ;;  %v68_v28 = vpop.permute.xlu1 %67  }
  0x8d   :  { %64 = vst.msk [vmem:[#allocation0] sm:$0x1] %vm63_vm10, %v62_v27  }
  0x8e   :  { %70 = vst.msk [vmem:[#allocation0] sm:$0x1] %vm69_vm11, %v68_v28  }
  0x8f   :  { %76 = vst.msk [vmem:[#allocation0] sm:$0x1] %vm75_vm12, %v74_v21  }
  0x94   :  { %v80_v29 = vpop.permute.xlu0 %79   ;;  %v86_v30 = vpop.permute.xlu1 %85  }
  0x95   :  { %82 = vst.msk [vmem:[#allocation0] sm:$0x1] %vm81_vm13, %v80_v29  }
  0x96   :  { %88 = vst.msk [vmem:[#allocation0] sm:$0x1] %vm87_vm14, %v86_v30  }
  0x97   :  { %94 = vst.msk [vmem:[#allocation0] sm:$0x1] %vm93_vm15, %v92_v24  }
  0x9e   :  { %v97_v31 = vld [vmem:[#allocation0] sm:$0x1] }
  0x9f   :  { %100 = vst [vmem:[%s208_s1] sm:$0x1] %v97_v31 }

// kernel: batch_norm_adapter_1d.2
= control target key start
LH: loop header
LB: loop body
LE: loop exit
PB: predicated region body
PF: predicated region fallthrough
CT: control target
= control target key end

     0   :  { %s807_s6 = smov 0   ;;  %s809_s7 = smov 0   ;;  %s975_s0 = inlined_call_operand.vmem [shape: f32[2048,128], index: 0, kind: input, shape index: {}]   ;;  %s976_s1 = inlined_call_operand.vmem [shape: f32[2,2,128], index: 1, kind: output, shape index: {}]  }
   0x1   :  { %s811_s8 = smov 0  }
   0x2 LB: > { %s23_s9 = sadd.s32 1, %s791_s7  ;;  %p743_p0 = scmp.ge.s32.totalorder %s795_s8, 1  ;;  %s795_s8 = sphi %s811_s8, %s11_s8   ;;  %s791_s7 = sphi %s809_s7, %s978_s7   ;;  %s787_s6 = sphi %s807_s6, %s977_s6  }
   0x3   : > { %p25_p1 = scmp.ge.s32.totalorder %s23_s9, 2  ;;  %p104_p2 = scmp.lt.s32.totalorder %s795_s8, 3 }
   0x5   : > { %s980_s9 = smov (%p25_p1, %s23_s9), 0  ;;  %p105_p3 = pnand %p743_p0, %p104_p2 }
   0x6   : > { %s744_s10 = sshll.u32 (!%p105_p3), %s787_s6, 7  ;;  %p132_p5 = scmp.lt.s32.totalorder (!%p105_p3), %s787_s6, 1 }
   0x7   : > { %108 = sbr.rel (%p105_p3) target bundleno = 286 (0x11e), region = 24  ;;  %p126_p4 = scmp.lt.s32.totalorder (!%p105_p3), %s744_s10, 255 }
   0xc   : > { %s982_s10 = smov (!%p126_p4, %s744_s10), 255  ;;  %s984_s6 = smov (!%p132_p5, %s787_s6), 1  ;;  %vm675_vm0 = vcmask 1040384  }
   0xd   : > { %s745_s11 = sshll.u32 %s982_s10, 3  ;;  %s746_s15 = sshll.u32 %s984_s6, 1 }
   0xe   : > { %s831_s14 = scalar_lea.vmem %s975_s0, %s745_s11  ;;  %s135_s18 = scalar_lea.vmem %s976_s1, %s746_s15 }
   0xf   : > { %v142_v0 = vld [vmem:[%s831_s14] sm:$0xff]  ;;  %v143_v1 = vld [vmem:[%s831_s14 + $0x8] sm:$0xff]  ;;  %v144_v2 = vld [vmem:[%s831_s14 + $0x10] sm:$0xff] }
  0x10   : > { %v145_v3 = vld [vmem:[%s831_s14 + $0x18] sm:$0xff]  ;;  %v271_v4 = vadd.f32 %v143_v1, %v142_v0  ;;  %v401_v5 = vmul.f32 %v142_v0, %v142_v0  ;;  %v402_v6 = vmul.f32 %v143_v1, %v143_v1  ;;  %v403_v7 = vmul.f32 %v144_v2, %v144_v2  ;;  %v146_v8 = vld [vmem:[%s831_s14 + $0x20] sm:$0xff]  ;;  %v147_v12 = vld [vmem:[%s831_s14 + $0x28] sm:$0xff] }
  0x11   : > { %v404_v10 = vmul.f32 %v145_v3, %v145_v3  ;;  %v405_v14 = vmul.f32 %v146_v8, %v146_v8  ;;  %v148_v16 = vld [vmem:[%s831_s14 + $0x30] sm:$0xff]  ;;  %v406_v18 = vmul.f32 %v147_v12, %v147_v12  ;;  %v149_v20 = vld [vmem:[%s831_s14 + $0x38] sm:$0xff]  ;;  %v150_v24 = vld [vmem:[%s831_s14 + $0x40] sm:$0xff] }
  0x12   : > { %v272_v9 = vadd.f32 %v271_v4, %v144_v2  ;;  %v529_v11 = vadd.f32 %v402_v6, %v401_v5  ;;  %v407_v22 = vmul.f32 %v148_v16, %v148_v16  ;;  %v408_v26 = vmul.f32 %v149_v20, %v149_v20  ;;  %v151_v28 = vld [vmem:[%s831_s14 + $0x48] sm:$0xff]  ;;  %v152_v32 = vld [vmem:[%s831_s14 + $0x50] sm:$0xff]  ;;  %v153_v36 = vld [vmem:[%s831_s14 + $0x58] sm:$0xff] }
  0x13   : > { %v409_v30 = vmul.f32 %v150_v24, %v150_v24  ;;  %v410_v34 = vmul.f32 %v151_v28, %v151_v28  ;;  %v411_v38 = vmul.f32 %v152_v32, %v152_v32  ;;  %v154_v40 = vld [vmem:[%s831_s14 + $0x60] sm:$0xff]  ;;  %v412_v42 = vmul.f32 %v153_v36, %v153_v36  ;;  %v155_v44 = vld [vmem:[%s831_s14 + $0x68] sm:$0xff]  ;;  %v156_v48 = vld [vmem:[%s831_s14 + $0x70] sm:$0xff] }
  0x14   : > { %v273_v13 = vadd.f32 %v272_v9, %v145_v3  ;;  %v530_v15 = vadd.f32 %v529_v11, %v403_v7  ;;  %v413_v46 = vmul.f32 %v154_v40, %v154_v40  ;;  %v414_v50 = vmul.f32 %v155_v44, %v155_v44  ;;  %v157_v52 = vld [vmem:[%s831_s14 + $0x78] sm:$0xff]  ;;  %v158_v56 = vld [vmem:[%s831_s14 + $0x80] sm:$0xff]  ;;  %v159_v60 = vld [vmem:[%s831_s14 + $0x88] sm:$0xff] }
  0x15   : > { %v415_v54 = vmul.f32 %v156_v48, %v156_v48  ;;  %v416_v58 = vmul.f32 %v157_v52, %v157_v52  ;;  %v417_v62 = vmul.f32 %v158_v56, %v158_v56  ;;  %v160_v0 = vld [vmem:[%s831_s14 + $0x90] sm:$0xff]  ;;  %v418_v2 = vmul.f32 %v159_v60, %v159_v60  ;;  %v161_v4 = vld [vmem:[%s831_s14 + $0x98] sm:$0xff] }
  0x16   : > { %v274_v17 = vadd.f32 %v273_v13, %v146_v8  ;;  %v531_v19 = vadd.f32 %v530_v15, %v404_v10  ;;  %v419_v6 = vmul.f32 %v160_v0, %v160_v0  ;;  %v162_v8 = vld [vmem:[%s831_s14 + $0xa0] sm:$0xff]  ;;  %v420_v10 = vmul.f32 %v161_v4, %v161_v4 }
  0x18   : > { %v275_v21 = vadd.f32 %v274_v17, %v147_v12  ;;  %v532_v23 = vadd.f32 %v531_v19, %v405_v14  ;;  %v163_v12 = vld [vmem:[%s831_s14 + $0xa8] sm:$0xff]  ;;  %v421_v14 = vmul.f32 %v162_v8, %v162_v8 }
  0x1a   : > { %v276_v25 = vadd.f32 %v275_v21, %v148_v16  ;;  %v533_v27 = vadd.f32 %v532_v23, %v406_v18  ;;  %v164_v16 = vld [vmem:[%s831_s14 + $0xb0] sm:$0xff]  ;;  %v422_v18 = vmul.f32 %v163_v12, %v163_v12 }
  0x1c   : > { %v277_v29 = vadd.f32 %v276_v25, %v149_v20  ;;  %v534_v31 = vadd.f32 %v533_v27, %v407_v22  ;;  %v165_v20 = vld [vmem:[%s831_s14 + $0xb8] sm:$0xff]  ;;  %v423_v22 = vmul.f32 %v164_v16, %v164_v16 }
  0x1e   : > { %v278_v33 = vadd.f32 %v277_v29, %v150_v24  ;;  %v535_v35 = vadd.f32 %v534_v31, %v408_v26  ;;  %v166_v24 = vld [vmem:[%s831_s14 + $0xc0] sm:$0xff]  ;;  %v424_v26 = vmul.f32 %v165_v20, %v165_v20 }
  0x20   : > { %v279_v37 = vadd.f32 %v278_v33, %v151_v28  ;;  %v536_v39 = vadd.f32 %v535_v35, %v409_v30  ;;  %v167_v28 = vld [vmem:[%s831_s14 + $0xc8] sm:$0xff]  ;;  %v425_v30 = vmul.f32 %v166_v24, %v166_v24 }
  0x22   : > { %v280_v41 = vadd.f32 %v279_v37, %v152_v32  ;;  %v537_v43 = vadd.f32 %v536_v39, %v410_v34  ;;  %v168_v32 = vld [vmem:[%s831_s14 + $0xd0] sm:$0xff]  ;;  %v426_v34 = vmul.f32 %v167_v28, %v167_v28 }
  0x24   : > { %v281_v45 = vadd.f32 %v280_v41, %v153_v36  ;;  %v538_v47 = vadd.f32 %v537_v43, %v411_v38  ;;  %v169_v36 = vld [vmem:[%s831_s14 + $0xd8] sm:$0xff]  ;;  %v427_v38 = vmul.f32 %v168_v32, %v168_v32 }
  0x26   : > { %v282_v49 = vadd.f32 %v281_v45, %v154_v40  ;;  %v539_v51 = vadd.f32 %v538_v47, %v412_v42  ;;  %v170_v40 = vld [vmem:[%s831_s14 + $0xe0] sm:$0xff]  ;;  %v428_v42 = vmul.f32 %v169_v36, %v169_v36 }
  0x28   : > { %v283_v53 = vadd.f32 %v282_v49, %v155_v44  ;;  %v540_v55 = vadd.f32 %v539_v51, %v413_v46  ;;  %v171_v44 = vld [vmem:[%s831_s14 + $0xe8] sm:$0xff]  ;;  %v429_v46 = vmul.f32 %v170_v40, %v170_v40 }
  0x2a   : > { %v284_v57 = vadd.f32 %v283_v53, %v156_v48  ;;  %v541_v59 = vadd.f32 %v540_v55, %v414_v50  ;;  %v172_v48 = vld [vmem:[%s831_s14 + $0xf0] sm:$0xff]  ;;  %v430_v50 = vmul.f32 %v171_v44, %v171_v44 }
  0x2c   : > { %v285_v61 = vadd.f32 %v284_v57, %v157_v52  ;;  %v542_v63 = vadd.f32 %v541_v59, %v415_v54  ;;  %v173_v52 = vld [vmem:[%s831_s14 + $0xf8] sm:$0xff]  ;;  %v431_v54 = vmul.f32 %v172_v48, %v172_v48 }
  0x2e   : > { %v286_v1 = vadd.f32 %v285_v61, %v158_v56  ;;  %v543_v3 = vadd.f32 %v542_v63, %v416_v58  ;;  %v174_v56 = vld [vmem:[%s831_s14 + $0x100] sm:$0xff]  ;;  %v432_v58 = vmul.f32 %v173_v52, %v173_v52 }
  0x30   : > { %v287_v5 = vadd.f32 %v286_v1, %v159_v60  ;;  %v544_v7 = vadd.f32 %v543_v3, %v417_v62  ;;  %v175_v60 = vld [vmem:[%s831_s14 + $0x108] sm:$0xff]  ;;  %v433_v62 = vmul.f32 %v174_v56, %v174_v56 }
  0x32   : > { %v288_v9 = vadd.f32 %v287_v5, %v160_v0  ;;  %v545_v11 = vadd.f32 %v544_v7, %v418_v2  ;;  %v176_v0 = vld [vmem:[%s831_s14 + $0x110] sm:$0xff]  ;;  %v434_v2 = vmul.f32 %v175_v60, %v175_v60 }
  0x34   : > { %v289_v13 = vadd.f32 %v288_v9, %v161_v4  ;;  %v546_v15 = vadd.f32 %v545_v11, %v419_v6  ;;  %v177_v4 = vld [vmem:[%s831_s14 + $0x118] sm:$0xff]  ;;  %v435_v6 = vmul.f32 %v176_v0, %v176_v0 }
  0x36   : > { %v290_v17 = vadd.f32 %v289_v13, %v162_v8  ;;  %v547_v19 = vadd.f32 %v546_v15, %v420_v10  ;;  %v178_v8 = vld [vmem:[%s831_s14 + $0x120] sm:$0xff]  ;;  %v436_v10 = vmul.f32 %v177_v4, %v177_v4 }
  0x38   : > { %v291_v21 = vadd.f32 %v290_v17, %v163_v12  ;;  %v548_v23 = vadd.f32 %v547_v19, %v421_v14  ;;  %v179_v12 = vld [vmem:[%s831_s14 + $0x128] sm:$0xff]  ;;  %v437_v14 = vmul.f32 %v178_v8, %v178_v8 }
  0x3a   : > { %v292_v25 = vadd.f32 %v291_v21, %v164_v16  ;;  %v549_v27 = vadd.f32 %v548_v23, %v422_v18  ;;  %v180_v16 = vld [vmem:[%s831_s14 + $0x130] sm:$0xff]  ;;  %v438_v18 = vmul.f32 %v179_v12, %v179_v12 }
  0x3c   : > { %v293_v29 = vadd.f32 %v292_v25, %v165_v20  ;;  %v550_v31 = vadd.f32 %v549_v27, %v423_v22  ;;  %v181_v20 = vld [vmem:[%s831_s14 + $0x138] sm:$0xff]  ;;  %v439_v22 = vmul.f32 %v180_v16, %v180_v16 }
  0x3e   : > { %v294_v33 = vadd.f32 %v293_v29, %v166_v24  ;;  %v551_v35 = vadd.f32 %v550_v31, %v424_v26  ;;  %v182_v24 = vld [vmem:[%s831_s14 + $0x140] sm:$0xff]  ;;  %v440_v26 = vmul.f32 %v181_v20, %v181_v20 }
  0x40   : > { %v295_v37 = vadd.f32 %v294_v33, %v167_v28  ;;  %v552_v39 = vadd.f32 %v551_v35, %v425_v30  ;;  %v183_v28 = vld [vmem:[%s831_s14 + $0x148] sm:$0xff]  ;;  %v441_v30 = vmul.f32 %v182_v24, %v182_v24 }
  0x42   : > { %v296_v41 = vadd.f32 %v295_v37, %v168_v32  ;;  %v553_v43 = vadd.f32 %v552_v39, %v426_v34  ;;  %v184_v32 = vld [vmem:[%s831_s14 + $0x150] sm:$0xff]  ;;  %v442_v34 = vmul.f32 %v183_v28, %v183_v28 }
  0x44   : > { %v297_v45 = vadd.f32 %v296_v41, %v169_v36  ;;  %v554_v47 = vadd.f32 %v553_v43, %v427_v38  ;;  %v185_v36 = vld [vmem:[%s831_s14 + $0x158] sm:$0xff]  ;;  %v443_v38 = vmul.f32 %v184_v32, %v184_v32 }
  0x46   : > { %v298_v49 = vadd.f32 %v297_v45, %v170_v40  ;;  %v555_v51 = vadd.f32 %v554_v47, %v428_v42  ;;  %v186_v40 = vld [vmem:[%s831_s14 + $0x160] sm:$0xff]  ;;  %v444_v42 = vmul.f32 %v185_v36, %v185_v36 }
  0x48   : > { %v299_v53 = vadd.f32 %v298_v49, %v171_v44  ;;  %v556_v55 = vadd.f32 %v555_v51, %v429_v46  ;;  %v187_v44 = vld [vmem:[%s831_s14 + $0x168] sm:$0xff]  ;;  %v445_v46 = vmul.f32 %v186_v40, %v186_v40 }
  0x4a   : > { %v300_v57 = vadd.f32 %v299_v53, %v172_v48  ;;  %v557_v59 = vadd.f32 %v556_v55, %v430_v50  ;;  %v188_v48 = vld [vmem:[%s831_s14 + $0x170] sm:$0xff]  ;;  %v446_v50 = vmul.f32 %v187_v44, %v187_v44 }
  0x4c   : > { %v301_v61 = vadd.f32 %v300_v57, %v173_v52  ;;  %v558_v63 = vadd.f32 %v557_v59, %v431_v54  ;;  %v189_v52 = vld [vmem:[%s831_s14 + $0x178] sm:$0xff]  ;;  %v447_v54 = vmul.f32 %v188_v48, %v188_v48 }
  0x4e   : > { %v302_v1 = vadd.f32 %v301_v61, %v174_v56  ;;  %v559_v3 = vadd.f32 %v558_v63, %v432_v58  ;;  %v190_v56 = vld [vmem:[%s831_s14 + $0x180] sm:$0xff]  ;;  %v448_v58 = vmul.f32 %v189_v52, %v189_v52 }
  0x50   : > { %v303_v5 = vadd.f32 %v302_v1, %v175_v60  ;;  %v560_v7 = vadd.f32 %v559_v3, %v433_v62  ;;  %v191_v60 = vld [vmem:[%s831_s14 + $0x188] sm:$0xff]  ;;  %v449_v62 = vmul.f32 %v190_v56, %v190_v56 }
  0x52   : > { %v304_v9 = vadd.f32 %v303_v5, %v176_v0  ;;  %v561_v11 = vadd.f32 %v560_v7, %v434_v2  ;;  %v192_v0 = vld [vmem:[%s831_s14 + $0x190] sm:$0xff]  ;;  %v450_v2 = vmul.f32 %v191_v60, %v191_v60 }
  0x54   : > { %v305_v13 = vadd.f32 %v304_v9, %v177_v4  ;;  %v562_v15 = vadd.f32 %v561_v11, %v435_v6  ;;  %v193_v4 = vld [vmem:[%s831_s14 + $0x198] sm:$0xff]  ;;  %v451_v6 = vmul.f32 %v192_v0, %v192_v0 }
  0x56   : > { %v306_v17 = vadd.f32 %v305_v13, %v178_v8  ;;  %v563_v19 = vadd.f32 %v562_v15, %v436_v10  ;;  %v194_v8 = vld [vmem:[%s831_s14 + $0x1a0] sm:$0xff]  ;;  %v452_v10 = vmul.f32 %v193_v4, %v193_v4 }
  0x58   : > { %v307_v21 = vadd.f32 %v306_v17, %v179_v12  ;;  %v564_v23 = vadd.f32 %v563_v19, %v437_v14  ;;  %v195_v12 = vld [vmem:[%s831_s14 + $0x1a8] sm:$0xff]  ;;  %v453_v14 = vmul.f32 %v194_v8, %v194_v8 }
  0x5a   : > { %v308_v25 = vadd.f32 %v307_v21, %v180_v16  ;;  %v565_v27 = vadd.f32 %v564_v23, %v438_v18  ;;  %v196_v16 = vld [vmem:[%s831_s14 + $0x1b0] sm:$0xff]  ;;  %v454_v18 = vmul.f32 %v195_v12, %v195_v12 }
  0x5c   : > { %v309_v29 = vadd.f32 %v308_v25, %v181_v20  ;;  %v566_v31 = vadd.f32 %v565_v27, %v439_v22  ;;  %v197_v20 = vld [vmem:[%s831_s14 + $0x1b8] sm:$0xff]  ;;  %v455_v22 = vmul.f32 %v196_v16, %v196_v16 }
  0x5e   : > { %v310_v33 = vadd.f32 %v309_v29, %v182_v24  ;;  %v567_v35 = vadd.f32 %v566_v31, %v440_v26  ;;  %v198_v24 = vld [vmem:[%s831_s14 + $0x1c0] sm:$0xff]  ;;  %v456_v26 = vmul.f32 %v197_v20, %v197_v20 }
  0x60   : > { %v311_v37 = vadd.f32 %v310_v33, %v183_v28  ;;  %v568_v39 = vadd.f32 %v567_v35, %v441_v30  ;;  %v199_v28 = vld [vmem:[%s831_s14 + $0x1c8] sm:$0xff]  ;;  %v457_v30 = vmul.f32 %v198_v24, %v198_v24 }
  0x62   : > { %v312_v41 = vadd.f32 %v311_v37, %v184_v32  ;;  %v569_v43 = vadd.f32 %v568_v39, %v442_v34  ;;  %v200_v32 = vld [vmem:[%s831_s14 + $0x1d0] sm:$0xff]  ;;  %v458_v34 = vmul.f32 %v199_v28, %v199_v28 }
  0x64   : > { %v313_v45 = vadd.f32 %v312_v41, %v185_v36  ;;  %v570_v47 = vadd.f32 %v569_v43, %v443_v38  ;;  %v201_v36 = vld [vmem:[%s831_s14 + $0x1d8] sm:$0xff]  ;;  %v459_v38 = vmul.f32 %v200_v32, %v200_v32 }
  0x66   : > { %v314_v49 = vadd.f32 %v313_v45, %v186_v40  ;;  %v571_v51 = vadd.f32 %v570_v47, %v444_v42  ;;  %v202_v40 = vld [vmem:[%s831_s14 + $0x1e0] sm:$0xff]  ;;  %v460_v42 = vmul.f32 %v201_v36, %v201_v36 }
  0x68   : > { %v315_v53 = vadd.f32 %v314_v49, %v187_v44  ;;  %v572_v55 = vadd.f32 %v571_v51, %v445_v46  ;;  %v203_v44 = vld [vmem:[%s831_s14 + $0x1e8] sm:$0xff]  ;;  %v461_v46 = vmul.f32 %v202_v40, %v202_v40 }
  0x6a   : > { %v316_v57 = vadd.f32 %v315_v53, %v188_v48  ;;  %v573_v59 = vadd.f32 %v572_v55, %v446_v50  ;;  %v204_v48 = vld [vmem:[%s831_s14 + $0x1f0] sm:$0xff]  ;;  %v462_v50 = vmul.f32 %v203_v44, %v203_v44 }
  0x6c   : > { %v317_v61 = vadd.f32 %v316_v57, %v189_v52  ;;  %v574_v63 = vadd.f32 %v573_v59, %v447_v54  ;;  %v205_v52 = vld [vmem:[%s831_s14 + $0x1f8] sm:$0xff]  ;;  %v463_v54 = vmul.f32 %v204_v48, %v204_v48 }
  0x6e   : > { %v318_v1 = vadd.f32 %v317_v61, %v190_v56  ;;  %v575_v3 = vadd.f32 %v574_v63, %v448_v58  ;;  %v206_v56 = vld [vmem:[%s831_s14 + $0x200] sm:$0xff]  ;;  %v464_v58 = vmul.f32 %v205_v52, %v205_v52 }
  0x70   : > { %v319_v5 = vadd.f32 %v318_v1, %v191_v60  ;;  %v576_v7 = vadd.f32 %v575_v3, %v449_v62  ;;  %v207_v60 = vld [vmem:[%s831_s14 + $0x208] sm:$0xff]  ;;  %v465_v62 = vmul.f32 %v206_v56, %v206_v56 }
  0x72   : > { %v320_v9 = vadd.f32 %v319_v5, %v192_v0  ;;  %v577_v11 = vadd.f32 %v576_v7, %v450_v2  ;;  %v208_v0 = vld [vmem:[%s831_s14 + $0x210] sm:$0xff]  ;;  %v466_v2 = vmul.f32 %v207_v60, %v207_v60 }
  0x74   : > { %v321_v13 = vadd.f32 %v320_v9, %v193_v4  ;;  %v578_v15 = vadd.f32 %v577_v11, %v451_v6  ;;  %v209_v4 = vld [vmem:[%s831_s14 + $0x218] sm:$0xff]  ;;  %v467_v6 = vmul.f32 %v208_v0, %v208_v0 }
  0x76   : > { %v322_v17 = vadd.f32 %v321_v13, %v194_v8  ;;  %v579_v19 = vadd.f32 %v578_v15, %v452_v10  ;;  %v210_v8 = vld [vmem:[%s831_s14 + $0x220] sm:$0xff]  ;;  %v468_v10 = vmul.f32 %v209_v4, %v209_v4 }
  0x78   : > { %v323_v21 = vadd.f32 %v322_v17, %v195_v12  ;;  %v580_v23 = vadd.f32 %v579_v19, %v453_v14  ;;  %v211_v12 = vld [vmem:[%s831_s14 + $0x228] sm:$0xff]  ;;  %v469_v14 = vmul.f32 %v210_v8, %v210_v8 }
  0x7a   : > { %v324_v25 = vadd.f32 %v323_v21, %v196_v16  ;;  %v581_v27 = vadd.f32 %v580_v23, %v454_v18  ;;  %v212_v16 = vld [vmem:[%s831_s14 + $0x230] sm:$0xff]  ;;  %v470_v18 = vmul.f32 %v211_v12, %v211_v12 }
  0x7c   : > { %v325_v29 = vadd.f32 %v324_v25, %v197_v20  ;;  %v582_v31 = vadd.f32 %v581_v27, %v455_v22  ;;  %v213_v20 = vld [vmem:[%s831_s14 + $0x238] sm:$0xff]  ;;  %v471_v22 = vmul.f32 %v212_v16, %v212_v16 }
  0x7e   : > { %v326_v33 = vadd.f32 %v325_v29, %v198_v24  ;;  %v583_v35 = vadd.f32 %v582_v31, %v456_v26  ;;  %v214_v24 = vld [vmem:[%s831_s14 + $0x240] sm:$0xff]  ;;  %v472_v26 = vmul.f32 %v213_v20, %v213_v20 }
  0x80   : > { %v327_v37 = vadd.f32 %v326_v33, %v199_v28  ;;  %v584_v39 = vadd.f32 %v583_v35, %v457_v30  ;;  %v215_v28 = vld [vmem:[%s831_s14 + $0x248] sm:$0xff]  ;;  %v473_v30 = vmul.f32 %v214_v24, %v214_v24 }
  0x82   : > { %v328_v41 = vadd.f32 %v327_v37, %v200_v32  ;;  %v585_v43 = vadd.f32 %v584_v39, %v458_v34  ;;  %v216_v32 = vld [vmem:[%s831_s14 + $0x250] sm:$0xff]  ;;  %v474_v34 = vmul.f32 %v215_v28, %v215_v28 }
  0x84   : > { %v329_v45 = vadd.f32 %v328_v41, %v201_v36  ;;  %v586_v47 = vadd.f32 %v585_v43, %v459_v38  ;;  %v217_v36 = vld [vmem:[%s831_s14 + $0x258] sm:$0xff]  ;;  %v475_v38 = vmul.f32 %v216_v32, %v216_v32 }
  0x86   : > { %v330_v49 = vadd.f32 %v329_v45, %v202_v40  ;;  %v587_v51 = vadd.f32 %v586_v47, %v460_v42  ;;  %v218_v40 = vld [vmem:[%s831_s14 + $0x260] sm:$0xff]  ;;  %v476_v42 = vmul.f32 %v217_v36, %v217_v36 }
  0x88   : > { %v331_v53 = vadd.f32 %v330_v49, %v203_v44  ;;  %v588_v55 = vadd.f32 %v587_v51, %v461_v46  ;;  %v219_v44 = vld [vmem:[%s831_s14 + $0x268] sm:$0xff]  ;;  %v477_v46 = vmul.f32 %v218_v40, %v218_v40 }
  0x8a   : > { %v332_v57 = vadd.f32 %v331_v53, %v204_v48  ;;  %v589_v59 = vadd.f32 %v588_v55, %v462_v50  ;;  %v220_v48 = vld [vmem:[%s831_s14 + $0x270] sm:$0xff]  ;;  %v478_v50 = vmul.f32 %v219_v44, %v219_v44 }
  0x8c   : > { %v333_v61 = vadd.f32 %v332_v57, %v205_v52  ;;  %v590_v63 = vadd.f32 %v589_v59, %v463_v54  ;;  %v221_v52 = vld [vmem:[%s831_s14 + $0x278] sm:$0xff]  ;;  %v479_v54 = vmul.f32 %v220_v48, %v220_v48 }
  0x8e   : > { %v334_v1 = vadd.f32 %v333_v61, %v206_v56  ;;  %v591_v3 = vadd.f32 %v590_v63, %v464_v58  ;;  %v222_v56 = vld [vmem:[%s831_s14 + $0x280] sm:$0xff]  ;;  %v480_v58 = vmul.f32 %v221_v52, %v221_v52 }
  0x90   : > { %v335_v5 = vadd.f32 %v334_v1, %v207_v60  ;;  %v592_v7 = vadd.f32 %v591_v3, %v465_v62  ;;  %v223_v60 = vld [vmem:[%s831_s14 + $0x288] sm:$0xff]  ;;  %v481_v62 = vmul.f32 %v222_v56, %v222_v56 }
  0x92   : > { %v336_v9 = vadd.f32 %v335_v5, %v208_v0  ;;  %v593_v11 = vadd.f32 %v592_v7, %v466_v2  ;;  %v224_v0 = vld [vmem:[%s831_s14 + $0x290] sm:$0xff]  ;;  %v482_v2 = vmul.f32 %v223_v60, %v223_v60 }
  0x94   : > { %v337_v13 = vadd.f32 %v336_v9, %v209_v4  ;;  %v594_v15 = vadd.f32 %v593_v11, %v467_v6  ;;  %v225_v4 = vld [vmem:[%s831_s14 + $0x298] sm:$0xff]  ;;  %v483_v6 = vmul.f32 %v224_v0, %v224_v0 }
  0x96   : > { %v338_v17 = vadd.f32 %v337_v13, %v210_v8  ;;  %v595_v19 = vadd.f32 %v594_v15, %v468_v10  ;;  %v226_v8 = vld [vmem:[%s831_s14 + $0x2a0] sm:$0xff]  ;;  %v484_v10 = vmul.f32 %v225_v4, %v225_v4 }
  0x98   : > { %v339_v21 = vadd.f32 %v338_v17, %v211_v12  ;;  %v596_v23 = vadd.f32 %v595_v19, %v469_v14  ;;  %v227_v12 = vld [vmem:[%s831_s14 + $0x2a8] sm:$0xff]  ;;  %v485_v14 = vmul.f32 %v226_v8, %v226_v8 }
  0x9a   : > { %v340_v25 = vadd.f32 %v339_v21, %v212_v16  ;;  %v597_v27 = vadd.f32 %v596_v23, %v470_v18  ;;  %v228_v16 = vld [vmem:[%s831_s14 + $0x2b0] sm:$0xff]  ;;  %v486_v18 = vmul.f32 %v227_v12, %v227_v12 }
  0x9c   : > { %v341_v29 = vadd.f32 %v340_v25, %v213_v20  ;;  %v598_v31 = vadd.f32 %v597_v27, %v471_v22  ;;  %v229_v20 = vld [vmem:[%s831_s14 + $0x2b8] sm:$0xff]  ;;  %v487_v22 = vmul.f32 %v228_v16, %v228_v16 }
  0x9e   : > { %v342_v33 = vadd.f32 %v341_v29, %v214_v24  ;;  %v599_v35 = vadd.f32 %v598_v31, %v472_v26  ;;  %v230_v24 = vld [vmem:[%s831_s14 + $0x2c0] sm:$0xff]  ;;  %v488_v26 = vmul.f32 %v229_v20, %v229_v20 }
  0xa0   : > { %v343_v37 = vadd.f32 %v342_v33, %v215_v28  ;;  %v600_v39 = vadd.f32 %v599_v35, %v473_v30  ;;  %v231_v28 = vld [vmem:[%s831_s14 + $0x2c8] sm:$0xff]  ;;  %v489_v30 = vmul.f32 %v230_v24, %v230_v24 }
  0xa2   : > { %v344_v41 = vadd.f32 %v343_v37, %v216_v32  ;;  %v601_v43 = vadd.f32 %v600_v39, %v474_v34  ;;  %v232_v32 = vld [vmem:[%s831_s14 + $0x2d0] sm:$0xff]  ;;  %v490_v34 = vmul.f32 %v231_v28, %v231_v28 }
  0xa4   : > { %v345_v45 = vadd.f32 %v344_v41, %v217_v36  ;;  %v602_v47 = vadd.f32 %v601_v43, %v475_v38  ;;  %v233_v36 = vld [vmem:[%s831_s14 + $0x2d8] sm:$0xff]  ;;  %v491_v38 = vmul.f32 %v232_v32, %v232_v32 }
  0xa6   : > { %v346_v49 = vadd.f32 %v345_v45, %v218_v40  ;;  %v603_v51 = vadd.f32 %v602_v47, %v476_v42  ;;  %v234_v40 = vld [vmem:[%s831_s14 + $0x2e0] sm:$0xff]  ;;  %v492_v42 = vmul.f32 %v233_v36, %v233_v36 }
  0xa8   : > { %v347_v53 = vadd.f32 %v346_v49, %v219_v44  ;;  %v604_v55 = vadd.f32 %v603_v51, %v477_v46  ;;  %v235_v44 = vld [vmem:[%s831_s14 + $0x2e8] sm:$0xff]  ;;  %v493_v46 = vmul.f32 %v234_v40, %v234_v40 }
  0xaa   : > { %v348_v57 = vadd.f32 %v347_v53, %v220_v48  ;;  %v605_v59 = vadd.f32 %v604_v55, %v478_v50  ;;  %v236_v48 = vld [vmem:[%s831_s14 + $0x2f0] sm:$0xff]  ;;  %v494_v50 = vmul.f32 %v235_v44, %v235_v44 }
  0xac   : > { %v349_v61 = vadd.f32 %v348_v57, %v221_v52  ;;  %v606_v63 = vadd.f32 %v605_v59, %v479_v54  ;;  %v237_v52 = vld [vmem:[%s831_s14 + $0x2f8] sm:$0xff]  ;;  %v495_v54 = vmul.f32 %v236_v48, %v236_v48 }
  0xae   : > { %v350_v1 = vadd.f32 %v349_v61, %v222_v56  ;;  %v607_v3 = vadd.f32 %v606_v63, %v480_v58  ;;  %v238_v56 = vld [vmem:[%s831_s14 + $0x300] sm:$0xff]  ;;  %v496_v58 = vmul.f32 %v237_v52, %v237_v52 }
  0xb0   : > { %v351_v5 = vadd.f32 %v350_v1, %v223_v60  ;;  %v608_v7 = vadd.f32 %v607_v3, %v481_v62  ;;  %v239_v60 = vld [vmem:[%s831_s14 + $0x308] sm:$0xff]  ;;  %v497_v62 = vmul.f32 %v238_v56, %v238_v56 }
  0xb2   : > { %v352_v9 = vadd.f32 %v351_v5, %v224_v0  ;;  %v609_v11 = vadd.f32 %v608_v7, %v482_v2  ;;  %v240_v0 = vld [vmem:[%s831_s14 + $0x310] sm:$0xff]  ;;  %v498_v2 = vmul.f32 %v239_v60, %v239_v60 }
  0xb4   : > { %v353_v13 = vadd.f32 %v352_v9, %v225_v4  ;;  %v610_v15 = vadd.f32 %v609_v11, %v483_v6  ;;  %v241_v4 = vld [vmem:[%s831_s14 + $0x318] sm:$0xff]  ;;  %v499_v6 = vmul.f32 %v240_v0, %v240_v0 }
  0xb6   : > { %v354_v17 = vadd.f32 %v353_v13, %v226_v8  ;;  %v611_v19 = vadd.f32 %v610_v15, %v484_v10  ;;  %v242_v8 = vld [vmem:[%s831_s14 + $0x320] sm:$0xff]  ;;  %v500_v10 = vmul.f32 %v241_v4, %v241_v4 }
  0xb8   : > { %v355_v21 = vadd.f32 %v354_v17, %v227_v12  ;;  %v612_v23 = vadd.f32 %v611_v19, %v485_v14  ;;  %v243_v12 = vld [vmem:[%s831_s14 + $0x328] sm:$0xff]  ;;  %v501_v14 = vmul.f32 %v242_v8, %v242_v8 }
  0xba   : > { %v356_v25 = vadd.f32 %v355_v21, %v228_v16  ;;  %v613_v27 = vadd.f32 %v612_v23, %v486_v18  ;;  %v244_v16 = vld [vmem:[%s831_s14 + $0x330] sm:$0xff]  ;;  %v502_v18 = vmul.f32 %v243_v12, %v243_v12 }
  0xbc   : > { %v357_v29 = vadd.f32 %v356_v25, %v229_v20  ;;  %v614_v31 = vadd.f32 %v613_v27, %v487_v22  ;;  %v245_v20 = vld [vmem:[%s831_s14 + $0x338] sm:$0xff]  ;;  %v503_v22 = vmul.f32 %v244_v16, %v244_v16 }
  0xbe   : > { %v358_v33 = vadd.f32 %v357_v29, %v230_v24  ;;  %v615_v35 = vadd.f32 %v614_v31, %v488_v26  ;;  %v246_v24 = vld [vmem:[%s831_s14 + $0x340] sm:$0xff]  ;;  %v504_v26 = vmul.f32 %v245_v20, %v245_v20 }
  0xc0   : > { %v359_v37 = vadd.f32 %v358_v33, %v231_v28  ;;  %v616_v39 = vadd.f32 %v615_v35, %v489_v30  ;;  %v247_v28 = vld [vmem:[%s831_s14 + $0x348] sm:$0xff]  ;;  %v505_v30 = vmul.f32 %v246_v24, %v246_v24 }
  0xc2   : > { %v360_v41 = vadd.f32 %v359_v37, %v232_v32  ;;  %v617_v43 = vadd.f32 %v616_v39, %v490_v34  ;;  %v248_v32 = vld [vmem:[%s831_s14 + $0x350] sm:$0xff]  ;;  %v506_v34 = vmul.f32 %v247_v28, %v247_v28 }
  0xc4   : > { %v361_v45 = vadd.f32 %v360_v41, %v233_v36  ;;  %v618_v47 = vadd.f32 %v617_v43, %v491_v38  ;;  %v249_v36 = vld [vmem:[%s831_s14 + $0x358] sm:$0xff]  ;;  %v507_v38 = vmul.f32 %v248_v32, %v248_v32 }
  0xc6   : > { %v362_v49 = vadd.f32 %v361_v45, %v234_v40  ;;  %v619_v51 = vadd.f32 %v618_v47, %v492_v42  ;;  %v250_v40 = vld [vmem:[%s831_s14 + $0x360] sm:$0xff]  ;;  %v508_v42 = vmul.f32 %v249_v36, %v249_v36 }
  0xc8   : > { %v363_v53 = vadd.f32 %v362_v49, %v235_v44  ;;  %v620_v55 = vadd.f32 %v619_v51, %v493_v46  ;;  %v251_v44 = vld [vmem:[%s831_s14 + $0x368] sm:$0xff]  ;;  %v509_v46 = vmul.f32 %v250_v40, %v250_v40 }
  0xca   : > { %v364_v57 = vadd.f32 %v363_v53, %v236_v48  ;;  %v621_v59 = vadd.f32 %v620_v55, %v494_v50  ;;  %v252_v48 = vld [vmem:[%s831_s14 + $0x370] sm:$0xff]  ;;  %v510_v50 = vmul.f32 %v251_v44, %v251_v44 }
  0xcc   : > { %v365_v61 = vadd.f32 %v364_v57, %v237_v52  ;;  %v622_v63 = vadd.f32 %v621_v59, %v495_v54  ;;  %v253_v52 = vld [vmem:[%s831_s14 + $0x378] sm:$0xff]  ;;  %v511_v54 = vmul.f32 %v252_v48, %v252_v48 }
  0xce   : > { %v366_v1 = vadd.f32 %v365_v61, %v238_v56  ;;  %v623_v3 = vadd.f32 %v622_v63, %v496_v58  ;;  %v254_v56 = vld [vmem:[%s831_s14 + $0x380] sm:$0xff]  ;;  %v512_v58 = vmul.f32 %v253_v52, %v253_v52 }
  0xd0   : > { %v367_v5 = vadd.f32 %v366_v1, %v239_v60  ;;  %v624_v7 = vadd.f32 %v623_v3, %v497_v62  ;;  %v255_v60 = vld [vmem:[%s831_s14 + $0x388] sm:$0xff]  ;;  %v513_v62 = vmul.f32 %v254_v56, %v254_v56 }
  0xd2   : > { %v368_v9 = vadd.f32 %v367_v5, %v240_v0  ;;  %v625_v11 = vadd.f32 %v624_v7, %v498_v2  ;;  %v256_v0 = vld [vmem:[%s831_s14 + $0x390] sm:$0xff]  ;;  %v514_v2 = vmul.f32 %v255_v60, %v255_v60 }
  0xd4   : > { %v369_v13 = vadd.f32 %v368_v9, %v241_v4  ;;  %v626_v15 = vadd.f32 %v625_v11, %v499_v6  ;;  %v257_v4 = vld [vmem:[%s831_s14 + $0x398] sm:$0xff]  ;;  %v515_v6 = vmul.f32 %v256_v0, %v256_v0 }
  0xd6   : > { %v370_v17 = vadd.f32 %v369_v13, %v242_v8  ;;  %v627_v19 = vadd.f32 %v626_v15, %v500_v10  ;;  %v258_v8 = vld [vmem:[%s831_s14 + $0x3a0] sm:$0xff]  ;;  %v516_v10 = vmul.f32 %v257_v4, %v257_v4 }
  0xd8   : > { %v371_v21 = vadd.f32 %v370_v17, %v243_v12  ;;  %v628_v23 = vadd.f32 %v627_v19, %v501_v14  ;;  %v259_v12 = vld [vmem:[%s831_s14 + $0x3a8] sm:$0xff]  ;;  %v517_v14 = vmul.f32 %v258_v8, %v258_v8 }
  0xda   : > { %v372_v25 = vadd.f32 %v371_v21, %v244_v16  ;;  %v629_v27 = vadd.f32 %v628_v23, %v502_v18  ;;  %v260_v16 = vld [vmem:[%s831_s14 + $0x3b0] sm:$0xff]  ;;  %v518_v18 = vmul.f32 %v259_v12, %v259_v12 }
  0xdc   : > { %v373_v29 = vadd.f32 %v372_v25, %v245_v20  ;;  %v630_v31 = vadd.f32 %v629_v27, %v503_v22  ;;  %v261_v20 = vld [vmem:[%s831_s14 + $0x3b8] sm:$0xff]  ;;  %v519_v22 = vmul.f32 %v260_v16, %v260_v16 }
  0xde   : > { %v374_v33 = vadd.f32 %v373_v29, %v246_v24  ;;  %v631_v35 = vadd.f32 %v630_v31, %v504_v26  ;;  %v262_v24 = vld [vmem:[%s831_s14 + $0x3c0] sm:$0xff]  ;;  %v520_v26 = vmul.f32 %v261_v20, %v261_v20 }
  0xe0   : > { %v375_v37 = vadd.f32 %v374_v33, %v247_v28  ;;  %v632_v39 = vadd.f32 %v631_v35, %v505_v30  ;;  %v263_v28 = vld [vmem:[%s831_s14 + $0x3c8] sm:$0xff]  ;;  %v521_v30 = vmul.f32 %v262_v24, %v262_v24 }
  0xe2   : > { %v376_v41 = vadd.f32 %v375_v37, %v248_v32  ;;  %v633_v43 = vadd.f32 %v632_v39, %v506_v34  ;;  %v264_v32 = vld [vmem:[%s831_s14 + $0x3d0] sm:$0xff]  ;;  %v522_v34 = vmul.f32 %v263_v28, %v263_v28 }
  0xe4   : > { %v377_v45 = vadd.f32 %v376_v41, %v249_v36  ;;  %v634_v47 = vadd.f32 %v633_v43, %v507_v38  ;;  %v265_v36 = vld [vmem:[%s831_s14 + $0x3d8] sm:$0xff]  ;;  %v523_v38 = vmul.f32 %v264_v32, %v264_v32 }
  0xe6   : > { %v378_v49 = vadd.f32 %v377_v45, %v250_v40  ;;  %v635_v51 = vadd.f32 %v634_v47, %v508_v42  ;;  %v266_v40 = vld [vmem:[%s831_s14 + $0x3e0] sm:$0xff]  ;;  %v524_v42 = vmul.f32 %v265_v36, %v265_v36 }
  0xe8   : > { %v379_v53 = vadd.f32 %v378_v49, %v251_v44  ;;  %v636_v55 = vadd.f32 %v635_v51, %v509_v46  ;;  %v267_v44 = vld [vmem:[%s831_s14 + $0x3e8] sm:$0xff]  ;;  %v525_v46 = vmul.f32 %v266_v40, %v266_v40 }
  0xea   : > { %v380_v57 = vadd.f32 %v379_v53, %v252_v48  ;;  %v637_v59 = vadd.f32 %v636_v55, %v510_v50  ;;  %v268_v48 = vld [vmem:[%s831_s14 + $0x3f0] sm:$0xff]  ;;  %v526_v50 = vmul.f32 %v267_v44, %v267_v44 }
  0xec   : > { %v381_v61 = vadd.f32 %v380_v57, %v253_v52  ;;  %v638_v63 = vadd.f32 %v637_v59, %v511_v54  ;;  %v269_v52 = vld [vmem:[%s831_s14 + $0x3f8] sm:$0xff]  ;;  %v527_v54 = vmul.f32 %v268_v48, %v268_v48 }
  0xed   : > { %v528_v57 = vmul.f32 %v269_v52, %v269_v52 }
  0xee   : > { %v382_v1 = vadd.f32 %v381_v61, %v254_v56  ;;  %v639_v3 = vadd.f32 %v638_v63, %v512_v58 }
  0xf0   : > { %v383_v5 = vadd.f32 %v382_v1, %v255_v60  ;;  %v640_v7 = vadd.f32 %v639_v3, %v513_v62 }
  0xf2   : > { %v384_v9 = vadd.f32 %v383_v5, %v256_v0  ;;  %v641_v11 = vadd.f32 %v640_v7, %v514_v2 }
  0xf4   : > { %v385_v13 = vadd.f32 %v384_v9, %v257_v4  ;;  %v642_v15 = vadd.f32 %v641_v11, %v515_v6 }
  0xf6   : > { %v386_v17 = vadd.f32 %v385_v13, %v258_v8  ;;  %v643_v19 = vadd.f32 %v642_v15, %v516_v10 }
  0xf8   : > { %v387_v21 = vadd.f32 %v386_v17, %v259_v12  ;;  %v644_v23 = vadd.f32 %v643_v19, %v517_v14 }
  0xfa   : > { %v388_v25 = vadd.f32 %v387_v21, %v260_v16  ;;  %v645_v27 = vadd.f32 %v644_v23, %v518_v18 }
  0xfc   : > { %v389_v29 = vadd.f32 %v388_v25, %v261_v20  ;;  %v646_v31 = vadd.f32 %v645_v27, %v519_v22 }
  0xfe   : > { %v390_v33 = vadd.f32 %v389_v29, %v262_v24  ;;  %v647_v35 = vadd.f32 %v646_v31, %v520_v26 }
 0x100   : > { %v391_v37 = vadd.f32 %v390_v33, %v263_v28  ;;  %v648_v39 = vadd.f32 %v647_v35, %v521_v30 }
 0x102   : > { %v392_v41 = vadd.f32 %v391_v37, %v264_v32  ;;  %v649_v43 = vadd.f32 %v648_v39, %v522_v34 }
 0x104   : > { %v393_v45 = vadd.f32 %v392_v41, %v265_v36  ;;  %v650_v47 = vadd.f32 %v649_v43, %v523_v38 }
 0x106   : > { %v394_v49 = vadd.f32 %v393_v45, %v266_v40  ;;  %v651_v51 = vadd.f32 %v650_v47, %v524_v42 }
 0x108   : > { %v395_v53 = vadd.f32 %v394_v49, %v267_v44  ;;  %v652_v55 = vadd.f32 %v651_v51, %v525_v46 }
 0x10a   : > { %v396_v56 = vadd.f32 %v395_v53, %v268_v48  ;;  %v653_v58 = vadd.f32 %v652_v55, %v526_v50 }
 0x10c   : > { %v397_v59 = vadd.f32 %v396_v56, %v269_v52  ;;  %v654_v60 = vadd.f32 %v653_v58, %v527_v54 }
 0x10e   : > { %v662_v61 = vrot.slane %v397_v59, 4  ;;  %v655_v62 = vadd.f32 %v654_v60, %v528_v57 }
 0x110   : > { %v663_v63 = vadd.f32 %v662_v61, %v397_v59  ;;  %v669_v0 = vrot.slane %v655_v62, 4 }
 0x112   : > { %v664_v1 = vrot.slane %v663_v63, 2  ;;  %v670_v2 = vadd.f32 %v669_v0, %v655_v62 }
 0x114   : > { %v665_v3 = vadd.f32 %v664_v1, %v663_v63  ;;  %v671_v4 = vrot.slane %v670_v2, 2 }
 0x116   : > { %v666_v5 = vrot.slane %v665_v3, 1  ;;  %v672_v6 = vadd.f32 %v671_v4, %v670_v2 }
 0x118   : > { %v667_v7 = vadd.f32 %v666_v5, %v665_v3  ;;  %v673_v8 = vrot.slane %v672_v6, 1 }
 0x11a   : > { %v674_v9 = vadd.f32 %v673_v8, %v672_v6 }
 0x11c   : > { %v676_v10 = vsel %vm675_vm0, %v667_v7, %v674_v9 }
 0x11d   : > { %677 = vst [vmem:[%s135_s18] sm:$0x3] %v676_v10 }
 0x11e PF: > { %s11_s8 = sadd.s32 1, %s795_s8   ;;  %s977_s6 = smov %s791_s7 }
 0x11f   : > { %p8_p6 = scmp.ge.s32.totalorder %s11_s8, 4   ;;  %s978_s7 = smov %s980_s9 }
 0x121   :  { %10 = sbr.rel (!%p8_p6) target bundleno = 2 (0x2), region = 62 }

// kernel: batch_norm_adapter_1d.3
= control target key start
LH: loop header
LB: loop body
LE: loop exit
PB: predicated region body
PF: predicated region fallthrough
CT: control target
= control target key end

     0   :  { %s799_s12 = smov 0   ;;  %s1342_s0 = inlined_call_operand.vmem [shape: f32[2048,128], index: 0, kind: input, shape index: {}]   ;;  %s1343_s1 = inlined_call_operand.vmem [shape: f32[1,128], index: 1, kind: input, shape index: {}]   ;;  %s1344_s2 = inlined_call_operand.vmem [shape: f32[1,128], index: 2, kind: input, shape index: {}]   ;;  %s1345_s3 = inlined_call_operand.vmem [shape: f32[2048,128], index: 3, kind: output, shape index: {}]  }
   0x1 LB: > { %s750_s13 = sadd.s32 4294967295, %s777_s12   ;;  %p754_p0 = scmp.ge.s32.totalorder %s777_s12, 1  ;;  %s777_s12 = sphi %s799_s12, %s13_s12  }
   0x2   : > { %p138_p1 = scmp.lt.s32.totalorder %s777_s12, 3 }
   0x4   : > { %p139_p2 = pnand %p754_p0, %p138_p1 }
   0x5   : > { %s755_s14 = sshll.u32 (!%p139_p2), %s750_s13, 7 }
   0x6   : > { %142 = sbr.rel (%p139_p2) target bundleno = 147 (0x93), region = 32  ;;  %p163_p3 = scmp.lt.s32.totalorder (!%p139_p2), %s755_s14, 255 }
   0xb   : > { %s1347_s14 = smov (!%p163_p3, %s755_s14), 255  ;;  %v810_v0 = vld [vmem:[%s1343_s1] ss:$0 sm:$0xff] }
   0xc   : > { %s756_s17 = sshll.u32 %s1347_s14, 3  ;;  %v820_v1 = vld [vmem:[%s1344_s2] ss:$0 sm:$0xff] }
   0xd   : > { %s815_s20 = scalar_lea.vmem %s1342_s0, %s756_s17  ;;  %s834_s25 = scalar_lea.vmem %s1345_s3, %s756_s17 }
   0xe   : > { %v174_v2 = vld [vmem:[%s815_s20] sm:$0xff]  ;;  %v175_v3 = vld [vmem:[%s815_s20 + $0x8] sm:$0xff]  ;;  %v176_v4 = vld [vmem:[%s815_s20 + $0x10] sm:$0xff] }
   0xf   : > { %v306_v5 = vmul.f32 %v810_v0, %v174_v2  ;;  %v307_v6 = vmul.f32 %v810_v0, %v175_v3  ;;  %v308_v7 = vmul.f32 %v810_v0, %v176_v4  ;;  %v177_v8 = vld [vmem:[%s815_s20 + $0x18] sm:$0xff]  ;;  %v178_v9 = vld [vmem:[%s815_s20 + $0x20] sm:$0xff]  ;;  %v179_v10 = vld [vmem:[%s815_s20 + $0x28] sm:$0xff] }
  0x10   : > { %v309_v11 = vmul.f32 %v810_v0, %v177_v8  ;;  %v310_v12 = vmul.f32 %v810_v0, %v178_v9  ;;  %v311_v13 = vmul.f32 %v810_v0, %v179_v10  ;;  %v180_v14 = vld [vmem:[%s815_s20 + $0x30] sm:$0xff]  ;;  %v181_v15 = vld [vmem:[%s815_s20 + $0x38] sm:$0xff]  ;;  %v182_v16 = vld [vmem:[%s815_s20 + $0x40] sm:$0xff] }
  0x11   : > { %v438_v17 = vadd.f32 %v820_v1, %v306_v5  ;;  %v439_v18 = vadd.f32 %v820_v1, %v307_v6  ;;  %v440_v19 = vadd.f32 %v820_v1, %v308_v7  ;;  %v312_v20 = vmul.f32 %v810_v0, %v180_v14  ;;  %v183_v21 = vld [vmem:[%s815_s20 + $0x48] sm:$0xff]  ;;  %v184_v24 = vld [vmem:[%s815_s20 + $0x50] sm:$0xff]  ;;  %v185_v27 = vld [vmem:[%s815_s20 + $0x58] sm:$0xff] }
  0x12   : > { %v441_v22 = vadd.f32 %v820_v1, %v309_v11  ;;  %v313_v23 = vmul.f32 %v810_v0, %v181_v15  ;;  %v442_v25 = vadd.f32 %v820_v1, %v310_v12  ;;  %v314_v26 = vmul.f32 %v810_v0, %v182_v16  ;;  %v186_v30 = vld [vmem:[%s815_s20 + $0x60] sm:$0xff]  ;;  %v187_v33 = vld [vmem:[%s815_s20 + $0x68] sm:$0xff]  ;;  %v188_v36 = vld [vmem:[%s815_s20 + $0x70] sm:$0xff] }
  0x13   : > { %566 = vst [vmem:[%s834_s25] sm:$0xff] %v438_v17  ;;  %v443_v28 = vadd.f32 %v820_v1, %v311_v13  ;;  %v315_v29 = vmul.f32 %v810_v0, %v183_v21  ;;  %v444_v31 = vadd.f32 %v820_v1, %v312_v20  ;;  %v316_v32 = vmul.f32 %v810_v0, %v184_v24  ;;  %v189_v39 = vld [vmem:[%s815_s20 + $0x78] sm:$0xff]  ;;  %v190_v42 = vld [vmem:[%s815_s20 + $0x80] sm:$0xff]  ;;  %v191_v45 = vld [vmem:[%s815_s20 + $0x88] sm:$0xff] }
  0x14   : > { %567 = vst [vmem:[%s834_s25 + $0x8] sm:$0xff] %v439_v18  ;;  %v445_v34 = vadd.f32 %v820_v1, %v313_v23  ;;  %v317_v35 = vmul.f32 %v810_v0, %v185_v27  ;;  %v446_v37 = vadd.f32 %v820_v1, %v314_v26  ;;  %v318_v38 = vmul.f32 %v810_v0, %v186_v30  ;;  %v192_v48 = vld [vmem:[%s815_s20 + $0x90] sm:$0xff]  ;;  %v193_v51 = vld [vmem:[%s815_s20 + $0x98] sm:$0xff]  ;;  %v194_v54 = vld [vmem:[%s815_s20 + $0xa0] sm:$0xff] }
  0x15   : > { %568 = vst [vmem:[%s834_s25 + $0x10] sm:$0xff] %v440_v19  ;;  %v447_v40 = vadd.f32 %v820_v1, %v315_v29  ;;  %v319_v41 = vmul.f32 %v810_v0, %v187_v33  ;;  %v448_v43 = vadd.f32 %v820_v1, %v316_v32  ;;  %v320_v44 = vmul.f32 %v810_v0, %v188_v36  ;;  %v195_v57 = vld [vmem:[%s815_s20 + $0xa8] sm:$0xff]  ;;  %v196_v60 = vld [vmem:[%s815_s20 + $0xb0] sm:$0xff]  ;;  %v197_v63 = vld [vmem:[%s815_s20 + $0xb8] sm:$0xff] }
  0x16   : > { %569 = vst [vmem:[%s834_s25 + $0x18] sm:$0xff] %v441_v22  ;;  %v449_v46 = vadd.f32 %v820_v1, %v317_v35  ;;  %v321_v47 = vmul.f32 %v810_v0, %v189_v39  ;;  %v450_v49 = vadd.f32 %v820_v1, %v318_v38  ;;  %v322_v50 = vmul.f32 %v810_v0, %v190_v42  ;;  %v198_v4 = vld [vmem:[%s815_s20 + $0xc0] sm:$0xff]  ;;  %v199_v7 = vld [vmem:[%s815_s20 + $0xc8] sm:$0xff]  ;;  %v200_v10 = vld [vmem:[%s815_s20 + $0xd0] sm:$0xff] }
  0x17   : > { %570 = vst [vmem:[%s834_s25 + $0x20] sm:$0xff] %v442_v25  ;;  %v451_v52 = vadd.f32 %v820_v1, %v319_v41  ;;  %v323_v53 = vmul.f32 %v810_v0, %v191_v45  ;;  %v452_v55 = vadd.f32 %v820_v1, %v320_v44  ;;  %v324_v56 = vmul.f32 %v810_v0, %v192_v48  ;;  %v201_v13 = vld [vmem:[%s815_s20 + $0xd8] sm:$0xff]  ;;  %v202_v16 = vld [vmem:[%s815_s20 + $0xe0] sm:$0xff]  ;;  %v203_v19 = vld [vmem:[%s815_s20 + $0xe8] sm:$0xff] }
  0x18   : > { %571 = vst [vmem:[%s834_s25 + $0x28] sm:$0xff] %v443_v28  ;;  %v453_v58 = vadd.f32 %v820_v1, %v321_v47  ;;  %v325_v59 = vmul.f32 %v810_v0, %v193_v51  ;;  %v454_v61 = vadd.f32 %v820_v1, %v322_v50  ;;  %v326_v62 = vmul.f32 %v810_v0, %v194_v54  ;;  %v204_v22 = vld [vmem:[%s815_s20 + $0xf0] sm:$0xff]  ;;  %v205_v25 = vld [vmem:[%s815_s20 + $0xf8] sm:$0xff]  ;;  %v206_v28 = vld [vmem:[%s815_s20 + $0x100] sm:$0xff] }
  0x19   : > { %572 = vst [vmem:[%s834_s25 + $0x30] sm:$0xff] %v444_v31  ;;  %v455_v2 = vadd.f32 %v820_v1, %v323_v53  ;;  %v327_v3 = vmul.f32 %v810_v0, %v195_v57  ;;  %v456_v5 = vadd.f32 %v820_v1, %v324_v56  ;;  %v328_v6 = vmul.f32 %v810_v0, %v196_v60  ;;  %v207_v31 = vld [vmem:[%s815_s20 + $0x108] sm:$0xff] }
  0x1a   : > { %573 = vst [vmem:[%s834_s25 + $0x38] sm:$0xff] %v445_v34  ;;  %v457_v8 = vadd.f32 %v820_v1, %v325_v59  ;;  %v329_v9 = vmul.f32 %v810_v0, %v197_v63  ;;  %v458_v11 = vadd.f32 %v820_v1, %v326_v62  ;;  %v330_v12 = vmul.f32 %v810_v0, %v198_v4  ;;  %v208_v34 = vld [vmem:[%s815_s20 + $0x110] sm:$0xff] }
  0x1b   : > { %574 = vst [vmem:[%s834_s25 + $0x40] sm:$0xff] %v446_v37  ;;  %v459_v14 = vadd.f32 %v820_v1, %v327_v3  ;;  %v331_v15 = vmul.f32 %v810_v0, %v199_v7  ;;  %v460_v17 = vadd.f32 %v820_v1, %v328_v6  ;;  %v332_v18 = vmul.f32 %v810_v0, %v200_v10  ;;  %v209_v37 = vld [vmem:[%s815_s20 + $0x118] sm:$0xff] }
  0x1c   : > { %575 = vst [vmem:[%s834_s25 + $0x48] sm:$0xff] %v447_v40  ;;  %v461_v20 = vadd.f32 %v820_v1, %v329_v9  ;;  %v333_v21 = vmul.f32 %v810_v0, %v201_v13  ;;  %v462_v23 = vadd.f32 %v820_v1, %v330_v12  ;;  %v334_v24 = vmul.f32 %v810_v0, %v202_v16  ;;  %v210_v40 = vld [vmem:[%s815_s20 + $0x120] sm:$0xff] }
  0x1d   : > { %576 = vst [vmem:[%s834_s25 + $0x50] sm:$0xff] %v448_v43  ;;  %v463_v26 = vadd.f32 %v820_v1, %v331_v15  ;;  %v335_v27 = vmul.f32 %v810_v0, %v203_v19  ;;  %v464_v29 = vadd.f32 %v820_v1, %v332_v18  ;;  %v336_v30 = vmul.f32 %v810_v0, %v204_v22  ;;  %v211_v43 = vld [vmem:[%s815_s20 + $0x128] sm:$0xff] }
  0x1e   : > { %577 = vst [vmem:[%s834_s25 + $0x58] sm:$0xff] %v449_v46  ;;  %v465_v32 = vadd.f32 %v820_v1, %v333_v21  ;;  %v337_v33 = vmul.f32 %v810_v0, %v205_v25  ;;  %v466_v35 = vadd.f32 %v820_v1, %v334_v24  ;;  %v338_v36 = vmul.f32 %v810_v0, %v206_v28  ;;  %v212_v46 = vld [vmem:[%s815_s20 + $0x130] sm:$0xff] }
  0x1f   : > { %578 = vst [vmem:[%s834_s25 + $0x60] sm:$0xff] %v450_v49  ;;  %v467_v38 = vadd.f32 %v820_v1, %v335_v27  ;;  %v339_v39 = vmul.f32 %v810_v0, %v207_v31  ;;  %v468_v41 = vadd.f32 %v820_v1, %v336_v30  ;;  %v340_v42 = vmul.f32 %v810_v0, %v208_v34  ;;  %v213_v49 = vld [vmem:[%s815_s20 + $0x138] sm:$0xff] }
  0x20   : > { %579 = vst [vmem:[%s834_s25 + $0x68] sm:$0xff] %v451_v52  ;;  %v469_v44 = vadd.f32 %v820_v1, %v337_v33  ;;  %v341_v45 = vmul.f32 %v810_v0, %v209_v37  ;;  %v470_v47 = vadd.f32 %v820_v1, %v338_v36  ;;  %v342_v48 = vmul.f32 %v810_v0, %v210_v40  ;;  %v214_v52 = vld [vmem:[%s815_s20 + $0x140] sm:$0xff] }
  0x21   : > { %580 = vst [vmem:[%s834_s25 + $0x70] sm:$0xff] %v452_v55  ;;  %v471_v50 = vadd.f32 %v820_v1, %v339_v39  ;;  %v343_v51 = vmul.f32 %v810_v0, %v211_v43  ;;  %v472_v53 = vadd.f32 %v820_v1, %v340_v42  ;;  %v344_v54 = vmul.f32 %v810_v0, %v212_v46  ;;  %v215_v55 = vld [vmem:[%s815_s20 + $0x148] sm:$0xff] }
  0x22   : > { %581 = vst [vmem:[%s834_s25 + $0x78] sm:$0xff] %v453_v58  ;;  %v473_v56 = vadd.f32 %v820_v1, %v341_v45  ;;  %v345_v57 = vmul.f32 %v810_v0, %v213_v49  ;;  %v216_v58 = vld [vmem:[%s815_s20 + $0x150] sm:$0xff]  ;;  %v474_v59 = vadd.f32 %v820_v1, %v342_v48  ;;  %v346_v60 = vmul.f32 %v810_v0, %v214_v52 }
  0x23   : > { %582 = vst [vmem:[%s834_s25 + $0x80] sm:$0xff] %v454_v61  ;;  %v217_v61 = vld [vmem:[%s815_s20 + $0x158] sm:$0xff]  ;;  %v475_v62 = vadd.f32 %v820_v1, %v343_v51  ;;  %v347_v63 = vmul.f32 %v810_v0, %v215_v55  ;;  %v476_v3 = vadd.f32 %v820_v1, %v344_v54  ;;  %v348_v4 = vmul.f32 %v810_v0, %v216_v58 }
  0x24   : > { %583 = vst [vmem:[%s834_s25 + $0x88] sm:$0xff] %v455_v2  ;;  %v218_v2 = vld [vmem:[%s815_s20 + $0x160] sm:$0xff]  ;;  %v477_v6 = vadd.f32 %v820_v1, %v345_v57  ;;  %v349_v7 = vmul.f32 %v810_v0, %v217_v61  ;;  %v478_v9 = vadd.f32 %v820_v1, %v346_v60 }
  0x25   : > { %584 = vst [vmem:[%s834_s25 + $0x90] sm:$0xff] %v456_v5  ;;  %v219_v5 = vld [vmem:[%s815_s20 + $0x168] sm:$0xff]  ;;  %v350_v10 = vmul.f32 %v810_v0, %v218_v2  ;;  %v479_v12 = vadd.f32 %v820_v1, %v347_v63  ;;  %v480_v15 = vadd.f32 %v820_v1, %v348_v4 }
  0x26   : > { %585 = vst [vmem:[%s834_s25 + $0x98] sm:$0xff] %v457_v8  ;;  %v220_v8 = vld [vmem:[%s815_s20 + $0x170] sm:$0xff]  ;;  %v351_v13 = vmul.f32 %v810_v0, %v219_v5  ;;  %v481_v18 = vadd.f32 %v820_v1, %v349_v7 }
  0x27   : > { %586 = vst [vmem:[%s834_s25 + $0xa0] sm:$0xff] %v458_v11  ;;  %v221_v11 = vld [vmem:[%s815_s20 + $0x178] sm:$0xff]  ;;  %v352_v16 = vmul.f32 %v810_v0, %v220_v8  ;;  %v482_v21 = vadd.f32 %v820_v1, %v350_v10 }
  0x28   : > { %587 = vst [vmem:[%s834_s25 + $0xa8] sm:$0xff] %v459_v14  ;;  %v222_v14 = vld [vmem:[%s815_s20 + $0x180] sm:$0xff]  ;;  %v353_v19 = vmul.f32 %v810_v0, %v221_v11  ;;  %v483_v24 = vadd.f32 %v820_v1, %v351_v13 }
  0x29   : > { %588 = vst [vmem:[%s834_s25 + $0xb0] sm:$0xff] %v460_v17  ;;  %v223_v17 = vld [vmem:[%s815_s20 + $0x188] sm:$0xff]  ;;  %v354_v22 = vmul.f32 %v810_v0, %v222_v14  ;;  %v484_v27 = vadd.f32 %v820_v1, %v352_v16 }
  0x2a   : > { %589 = vst [vmem:[%s834_s25 + $0xb8] sm:$0xff] %v461_v20  ;;  %v224_v20 = vld [vmem:[%s815_s20 + $0x190] sm:$0xff]  ;;  %v355_v25 = vmul.f32 %v810_v0, %v223_v17  ;;  %v485_v30 = vadd.f32 %v820_v1, %v353_v19 }
  0x2b   : > { %590 = vst [vmem:[%s834_s25 + $0xc0] sm:$0xff] %v462_v23  ;;  %v225_v23 = vld [vmem:[%s815_s20 + $0x198] sm:$0xff]  ;;  %v356_v28 = vmul.f32 %v810_v0, %v224_v20  ;;  %v486_v33 = vadd.f32 %v820_v1, %v354_v22 }
  0x2c   : > { %591 = vst [vmem:[%s834_s25 + $0xc8] sm:$0xff] %v463_v26  ;;  %v226_v26 = vld [vmem:[%s815_s20 + $0x1a0] sm:$0xff]  ;;  %v357_v31 = vmul.f32 %v810_v0, %v225_v23  ;;  %v487_v36 = vadd.f32 %v820_v1, %v355_v25 }
  0x2d   : > { %592 = vst [vmem:[%s834_s25 + $0xd0] sm:$0xff] %v464_v29  ;;  %v227_v29 = vld [vmem:[%s815_s20 + $0x1a8] sm:$0xff]  ;;  %v358_v34 = vmul.f32 %v810_v0, %v226_v26  ;;  %v488_v39 = vadd.f32 %v820_v1, %v356_v28 }
  0x2e   : > { %593 = vst [vmem:[%s834_s25 + $0xd8] sm:$0xff] %v465_v32  ;;  %v228_v32 = vld [vmem:[%s815_s20 + $0x1b0] sm:$0xff]  ;;  %v359_v37 = vmul.f32 %v810_v0, %v227_v29  ;;  %v489_v42 = vadd.f32 %v820_v1, %v357_v31 }
  0x2f   : > { %594 = vst [vmem:[%s834_s25 + $0xe0] sm:$0xff] %v466_v35  ;;  %v229_v35 = vld [vmem:[%s815_s20 + $0x1b8] sm:$0xff]  ;;  %v360_v40 = vmul.f32 %v810_v0, %v228_v32  ;;  %v490_v45 = vadd.f32 %v820_v1, %v358_v34 }
  0x30   : > { %595 = vst [vmem:[%s834_s25 + $0xe8] sm:$0xff] %v467_v38  ;;  %v230_v38 = vld [vmem:[%s815_s20 + $0x1c0] sm:$0xff]  ;;  %v361_v43 = vmul.f32 %v810_v0, %v229_v35  ;;  %v491_v48 = vadd.f32 %v820_v1, %v359_v37 }
  0x31   : > { %596 = vst [vmem:[%s834_s25 + $0xf0] sm:$0xff] %v468_v41  ;;  %v231_v41 = vld [vmem:[%s815_s20 + $0x1c8] sm:$0xff]  ;;  %v362_v46 = vmul.f32 %v810_v0, %v230_v38  ;;  %v492_v51 = vadd.f32 %v820_v1, %v360_v40 }
  0x32   : > { %597 = vst [vmem:[%s834_s25 + $0xf8] sm:$0xff] %v469_v44  ;;  %v232_v44 = vld [vmem:[%s815_s20 + $0x1d0] sm:$0xff]  ;;  %v363_v49 = vmul.f32 %v810_v0, %v231_v41  ;;  %v493_v54 = vadd.f32 %v820_v1, %v361_v43 }
  0x33   : > { %598 = vst [vmem:[%s834_s25 + $0x100] sm:$0xff] %v470_v47  ;;  %v233_v47 = vld [vmem:[%s815_s20 + $0x1d8] sm:$0xff]  ;;  %v364_v52 = vmul.f32 %v810_v0, %v232_v44  ;;  %v494_v57 = vadd.f32 %v820_v1, %v362_v46 }
  0x34   : > { %599 = vst [vmem:[%s834_s25 + $0x108] sm:$0xff] %v471_v50  ;;  %v234_v50 = vld [vmem:[%s815_s20 + $0x1e0] sm:$0xff]  ;;  %v365_v55 = vmul.f32 %v810_v0, %v233_v47  ;;  %v495_v60 = vadd.f32 %v820_v1, %v363_v49 }
  0x35   : > { %600 = vst [vmem:[%s834_s25 + $0x110] sm:$0xff] %v472_v53  ;;  %v235_v53 = vld [vmem:[%s815_s20 + $0x1e8] sm:$0xff]  ;;  %v366_v58 = vmul.f32 %v810_v0, %v234_v50  ;;  %v496_v63 = vadd.f32 %v820_v1, %v364_v52 }
  0x36   : > { %601 = vst [vmem:[%s834_s25 + $0x118] sm:$0xff] %v473_v56  ;;  %v236_v56 = vld [vmem:[%s815_s20 + $0x1f0] sm:$0xff]  ;;  %v367_v61 = vmul.f32 %v810_v0, %v235_v53  ;;  %v497_v4 = vadd.f32 %v820_v1, %v365_v55 }
  0x37   : > { %602 = vst [vmem:[%s834_s25 + $0x120] sm:$0xff] %v474_v59  ;;  %v237_v59 = vld [vmem:[%s815_s20 + $0x1f8] sm:$0xff]  ;;  %v368_v2 = vmul.f32 %v810_v0, %v236_v56  ;;  %v498_v7 = vadd.f32 %v820_v1, %v366_v58 }
  0x38   : > { %603 = vst [vmem:[%s834_s25 + $0x128] sm:$0xff] %v475_v62  ;;  %v238_v62 = vld [vmem:[%s815_s20 + $0x200] sm:$0xff]  ;;  %v369_v5 = vmul.f32 %v810_v0, %v237_v59  ;;  %v499_v10 = vadd.f32 %v820_v1, %v367_v61 }
  0x39   : > { %604 = vst [vmem:[%s834_s25 + $0x130] sm:$0xff] %v476_v3  ;;  %v239_v3 = vld [vmem:[%s815_s20 + $0x208] sm:$0xff]  ;;  %v370_v8 = vmul.f32 %v810_v0, %v238_v62  ;;  %v500_v13 = vadd.f32 %v820_v1, %v368_v2 }
  0x3a   : > { %605 = vst [vmem:[%s834_s25 + $0x138] sm:$0xff] %v477_v6  ;;  %v240_v6 = vld [vmem:[%s815_s20 + $0x210] sm:$0xff]  ;;  %v371_v11 = vmul.f32 %v810_v0, %v239_v3  ;;  %v501_v16 = vadd.f32 %v820_v1, %v369_v5 }
  0x3b   : > { %606 = vst [vmem:[%s834_s25 + $0x140] sm:$0xff] %v478_v9  ;;  %v241_v9 = vld [vmem:[%s815_s20 + $0x218] sm:$0xff]  ;;  %v372_v14 = vmul.f32 %v810_v0, %v240_v6  ;;  %v502_v19 = vadd.f32 %v820_v1, %v370_v8 }
  0x3c   : > { %607 = vst [vmem:[%s834_s25 + $0x148] sm:$0xff] %v479_v12  ;;  %v242_v12 = vld [vmem:[%s815_s20 + $0x220] sm:$0xff]  ;;  %v373_v17 = vmul.f32 %v810_v0, %v241_v9  ;;  %v503_v22 = vadd.f32 %v820_v1, %v371_v11 }
  0x3d   : > { %608 = vst [vmem:[%s834_s25 + $0x150] sm:$0xff] %v480_v15  ;;  %v243_v15 = vld [vmem:[%s815_s20 + $0x228] sm:$0xff]  ;;  %v374_v20 = vmul.f32 %v810_v0, %v242_v12  ;;  %v504_v25 = vadd.f32 %v820_v1, %v372_v14 }
  0x3e   : > { %609 = vst [vmem:[%s834_s25 + $0x158] sm:$0xff] %v481_v18  ;;  %v244_v18 = vld [vmem:[%s815_s20 + $0x230] sm:$0xff]  ;;  %v375_v23 = vmul.f32 %v810_v0, %v243_v15  ;;  %v505_v28 = vadd.f32 %v820_v1, %v373_v17 }
  0x3f   : > { %610 = vst [vmem:[%s834_s25 + $0x160] sm:$0xff] %v482_v21  ;;  %v245_v21 = vld [vmem:[%s815_s20 + $0x238] sm:$0xff]  ;;  %v376_v26 = vmul.f32 %v810_v0, %v244_v18  ;;  %v506_v31 = vadd.f32 %v820_v1, %v374_v20 }
  0x40   : > { %611 = vst [vmem:[%s834_s25 + $0x168] sm:$0xff] %v483_v24  ;;  %v246_v24 = vld [vmem:[%s815_s20 + $0x240] sm:$0xff]  ;;  %v377_v29 = vmul.f32 %v810_v0, %v245_v21  ;;  %v507_v34 = vadd.f32 %v820_v1, %v375_v23 }
  0x41   : > { %612 = vst [vmem:[%s834_s25 + $0x170] sm:$0xff] %v484_v27  ;;  %v247_v27 = vld [vmem:[%s815_s20 + $0x248] sm:$0xff]  ;;  %v378_v32 = vmul.f32 %v810_v0, %v246_v24  ;;  %v508_v37 = vadd.f32 %v820_v1, %v376_v26 }
  0x42   : > { %613 = vst [vmem:[%s834_s25 + $0x178] sm:$0xff] %v485_v30  ;;  %v248_v30 = vld [vmem:[%s815_s20 + $0x250] sm:$0xff]  ;;  %v379_v35 = vmul.f32 %v810_v0, %v247_v27  ;;  %v509_v40 = vadd.f32 %v820_v1, %v377_v29 }
  0x43   : > { %614 = vst [vmem:[%s834_s25 + $0x180] sm:$0xff] %v486_v33  ;;  %v249_v33 = vld [vmem:[%s815_s20 + $0x258] sm:$0xff]  ;;  %v380_v38 = vmul.f32 %v810_v0, %v248_v30  ;;  %v510_v43 = vadd.f32 %v820_v1, %v378_v32 }
  0x44   : > { %615 = vst [vmem:[%s834_s25 + $0x188] sm:$0xff] %v487_v36  ;;  %v250_v36 = vld [vmem:[%s815_s20 + $0x260] sm:$0xff]  ;;  %v381_v41 = vmul.f32 %v810_v0, %v249_v33  ;;  %v511_v46 = vadd.f32 %v820_v1, %v379_v35 }
  0x45   : > { %616 = vst [vmem:[%s834_s25 + $0x190] sm:$0xff] %v488_v39  ;;  %v251_v39 = vld [vmem:[%s815_s20 + $0x268] sm:$0xff]  ;;  %v382_v44 = vmul.f32 %v810_v0, %v250_v36  ;;  %v512_v49 = vadd.f32 %v820_v1, %v380_v38 }
  0x46   : > { %617 = vst [vmem:[%s834_s25 + $0x198] sm:$0xff] %v489_v42  ;;  %v252_v42 = vld [vmem:[%s815_s20 + $0x270] sm:$0xff]  ;;  %v383_v47 = vmul.f32 %v810_v0, %v251_v39  ;;  %v513_v52 = vadd.f32 %v820_v1, %v381_v41 }
  0x47   : > { %618 = vst [vmem:[%s834_s25 + $0x1a0] sm:$0xff] %v490_v45  ;;  %v253_v45 = vld [vmem:[%s815_s20 + $0x278] sm:$0xff]  ;;  %v384_v50 = vmul.f32 %v810_v0, %v252_v42  ;;  %v514_v55 = vadd.f32 %v820_v1, %v382_v44 }
  0x48   : > { %619 = vst [vmem:[%s834_s25 + $0x1a8] sm:$0xff] %v491_v48  ;;  %v254_v48 = vld [vmem:[%s815_s20 + $0x280] sm:$0xff]  ;;  %v385_v53 = vmul.f32 %v810_v0, %v253_v45  ;;  %v515_v58 = vadd.f32 %v820_v1, %v383_v47 }
  0x49   : > { %620 = vst [vmem:[%s834_s25 + $0x1b0] sm:$0xff] %v492_v51  ;;  %v255_v51 = vld [vmem:[%s815_s20 + $0x288] sm:$0xff]  ;;  %v386_v56 = vmul.f32 %v810_v0, %v254_v48  ;;  %v516_v61 = vadd.f32 %v820_v1, %v384_v50 }
  0x4a   : > { %621 = vst [vmem:[%s834_s25 + $0x1b8] sm:$0xff] %v493_v54  ;;  %v256_v54 = vld [vmem:[%s815_s20 + $0x290] sm:$0xff]  ;;  %v387_v59 = vmul.f32 %v810_v0, %v255_v51  ;;  %v517_v2 = vadd.f32 %v820_v1, %v385_v53 }
  0x4b   : > { %622 = vst [vmem:[%s834_s25 + $0x1c0] sm:$0xff] %v494_v57  ;;  %v257_v57 = vld [vmem:[%s815_s20 + $0x298] sm:$0xff]  ;;  %v388_v62 = vmul.f32 %v810_v0, %v256_v54  ;;  %v518_v5 = vadd.f32 %v820_v1, %v386_v56 }
  0x4c   : > { %623 = vst [vmem:[%s834_s25 + $0x1c8] sm:$0xff] %v495_v60  ;;  %v258_v60 = vld [vmem:[%s815_s20 + $0x2a0] sm:$0xff]  ;;  %v389_v3 = vmul.f32 %v810_v0, %v257_v57  ;;  %v519_v8 = vadd.f32 %v820_v1, %v387_v59 }
  0x4d   : > { %624 = vst [vmem:[%s834_s25 + $0x1d0] sm:$0xff] %v496_v63  ;;  %v259_v63 = vld [vmem:[%s815_s20 + $0x2a8] sm:$0xff]  ;;  %v390_v6 = vmul.f32 %v810_v0, %v258_v60  ;;  %v520_v11 = vadd.f32 %v820_v1, %v388_v62 }
  0x4e   : > { %625 = vst [vmem:[%s834_s25 + $0x1d8] sm:$0xff] %v497_v4  ;;  %v260_v4 = vld [vmem:[%s815_s20 + $0x2b0] sm:$0xff]  ;;  %v391_v9 = vmul.f32 %v810_v0, %v259_v63  ;;  %v521_v14 = vadd.f32 %v820_v1, %v389_v3 }
  0x4f   : > { %626 = vst [vmem:[%s834_s25 + $0x1e0] sm:$0xff] %v498_v7  ;;  %v261_v7 = vld [vmem:[%s815_s20 + $0x2b8] sm:$0xff]  ;;  %v392_v12 = vmul.f32 %v810_v0, %v260_v4  ;;  %v522_v17 = vadd.f32 %v820_v1, %v390_v6 }
  0x50   : > { %627 = vst [vmem:[%s834_s25 + $0x1e8] sm:$0xff] %v499_v10  ;;  %v262_v10 = vld [vmem:[%s815_s20 + $0x2c0] sm:$0xff]  ;;  %v393_v15 = vmul.f32 %v810_v0, %v261_v7  ;;  %v523_v20 = vadd.f32 %v820_v1, %v391_v9 }
  0x51   : > { %628 = vst [vmem:[%s834_s25 + $0x1f0] sm:$0xff] %v500_v13  ;;  %v263_v13 = vld [vmem:[%s815_s20 + $0x2c8] sm:$0xff]  ;;  %v394_v18 = vmul.f32 %v810_v0, %v262_v10  ;;  %v524_v23 = vadd.f32 %v820_v1, %v392_v12 }
  0x52   : > { %629 = vst [vmem:[%s834_s25 + $0x1f8] sm:$0xff] %v501_v16  ;;  %v264_v16 = vld [vmem:[%s815_s20 + $0x2d0] sm:$0xff]  ;;  %v395_v21 = vmul.f32 %v810_v0, %v263_v13  ;;  %v525_v26 = vadd.f32 %v820_v1, %v393_v15 }
  0x53   : > { %630 = vst [vmem:[%s834_s25 + $0x200] sm:$0xff] %v502_v19  ;;  %v265_v19 = vld [vmem:[%s815_s20 + $0x2d8] sm:$0xff]  ;;  %v396_v24 = vmul.f32 %v810_v0, %v264_v16  ;;  %v526_v29 = vadd.f32 %v820_v1, %v394_v18 }
  0x54   : > { %631 = vst [vmem:[%s834_s25 + $0x208] sm:$0xff] %v503_v22  ;;  %v266_v22 = vld [vmem:[%s815_s20 + $0x2e0] sm:$0xff]  ;;  %v397_v27 = vmul.f32 %v810_v0, %v265_v19  ;;  %v527_v32 = vadd.f32 %v820_v1, %v395_v21 }
  0x55   : > { %632 = vst [vmem:[%s834_s25 + $0x210] sm:$0xff] %v504_v25  ;;  %v267_v25 = vld [vmem:[%s815_s20 + $0x2e8] sm:$0xff]  ;;  %v398_v30 = vmul.f32 %v810_v0, %v266_v22  ;;  %v528_v35 = vadd.f32 %v820_v1, %v396_v24 }
  0x56   : > { %633 = vst [vmem:[%s834_s25 + $0x218] sm:$0xff] %v505_v28  ;;  %v268_v28 = vld [vmem:[%s815_s20 + $0x2f0] sm:$0xff]  ;;  %v399_v33 = vmul.f32 %v810_v0, %v267_v25  ;;  %v529_v38 = vadd.f32 %v820_v1, %v397_v27 }
  0x57   : > { %634 = vst [vmem:[%s834_s25 + $0x220] sm:$0xff] %v506_v31  ;;  %v269_v31 = vld [vmem:[%s815_s20 + $0x2f8] sm:$0xff]  ;;  %v400_v36 = vmul.f32 %v810_v0, %v268_v28  ;;  %v530_v41 = vadd.f32 %v820_v1, %v398_v30 }
  0x58   : > { %635 = vst [vmem:[%s834_s25 + $0x228] sm:$0xff] %v507_v34  ;;  %v270_v34 = vld [vmem:[%s815_s20 + $0x300] sm:$0xff]  ;;  %v401_v39 = vmul.f32 %v810_v0, %v269_v31  ;;  %v531_v44 = vadd.f32 %v820_v1, %v399_v33 }
  0x59   : > { %636 = vst [vmem:[%s834_s25 + $0x230] sm:$0xff] %v508_v37  ;;  %v271_v37 = vld [vmem:[%s815_s20 + $0x308] sm:$0xff]  ;;  %v402_v42 = vmul.f32 %v810_v0, %v270_v34  ;;  %v532_v47 = vadd.f32 %v820_v1, %v400_v36 }
  0x5a   : > { %637 = vst [vmem:[%s834_s25 + $0x238] sm:$0xff] %v509_v40  ;;  %v272_v40 = vld [vmem:[%s815_s20 + $0x310] sm:$0xff]  ;;  %v403_v45 = vmul.f32 %v810_v0, %v271_v37  ;;  %v533_v50 = vadd.f32 %v820_v1, %v401_v39 }
  0x5b   : > { %638 = vst [vmem:[%s834_s25 + $0x240] sm:$0xff] %v510_v43  ;;  %v273_v43 = vld [vmem:[%s815_s20 + $0x318] sm:$0xff]  ;;  %v404_v48 = vmul.f32 %v810_v0, %v272_v40  ;;  %v534_v53 = vadd.f32 %v820_v1, %v402_v42 }
  0x5c   : > { %639 = vst [vmem:[%s834_s25 + $0x248] sm:$0xff] %v511_v46  ;;  %v274_v46 = vld [vmem:[%s815_s20 + $0x320] sm:$0xff]  ;;  %v405_v51 = vmul.f32 %v810_v0, %v273_v43  ;;  %v535_v56 = vadd.f32 %v820_v1, %v403_v45 }
  0x5d   : > { %640 = vst [vmem:[%s834_s25 + $0x250] sm:$0xff] %v512_v49  ;;  %v275_v49 = vld [vmem:[%s815_s20 + $0x328] sm:$0xff]  ;;  %v406_v54 = vmul.f32 %v810_v0, %v274_v46  ;;  %v536_v59 = vadd.f32 %v820_v1, %v404_v48 }
  0x5e   : > { %641 = vst [vmem:[%s834_s25 + $0x258] sm:$0xff] %v513_v52  ;;  %v276_v52 = vld [vmem:[%s815_s20 + $0x330] sm:$0xff]  ;;  %v407_v57 = vmul.f32 %v810_v0, %v275_v49  ;;  %v537_v62 = vadd.f32 %v820_v1, %v405_v51 }
  0x5f   : > { %642 = vst [vmem:[%s834_s25 + $0x260] sm:$0xff] %v514_v55  ;;  %v277_v55 = vld [vmem:[%s815_s20 + $0x338] sm:$0xff]  ;;  %v408_v60 = vmul.f32 %v810_v0, %v276_v52  ;;  %v538_v3 = vadd.f32 %v820_v1, %v406_v54 }
  0x60   : > { %643 = vst [vmem:[%s834_s25 + $0x268] sm:$0xff] %v515_v58  ;;  %v278_v58 = vld [vmem:[%s815_s20 + $0x340] sm:$0xff]  ;;  %v409_v63 = vmul.f32 %v810_v0, %v277_v55  ;;  %v539_v6 = vadd.f32 %v820_v1, %v407_v57 }
  0x61   : > { %644 = vst [vmem:[%s834_s25 + $0x270] sm:$0xff] %v516_v61  ;;  %v279_v61 = vld [vmem:[%s815_s20 + $0x348] sm:$0xff]  ;;  %v410_v4 = vmul.f32 %v810_v0, %v278_v58  ;;  %v540_v9 = vadd.f32 %v820_v1, %v408_v60 }
  0x62   : > { %645 = vst [vmem:[%s834_s25 + $0x278] sm:$0xff] %v517_v2  ;;  %v280_v2 = vld [vmem:[%s815_s20 + $0x350] sm:$0xff]  ;;  %v411_v7 = vmul.f32 %v810_v0, %v279_v61  ;;  %v541_v12 = vadd.f32 %v820_v1, %v409_v63 }
  0x63   : > { %646 = vst [vmem:[%s834_s25 + $0x280] sm:$0xff] %v518_v5  ;;  %v281_v5 = vld [vmem:[%s815_s20 + $0x358] sm:$0xff]  ;;  %v412_v10 = vmul.f32 %v810_v0, %v280_v2  ;;  %v542_v15 = vadd.f32 %v820_v1, %v410_v4 }
  0x64   : > { %647 = vst [vmem:[%s834_s25 + $0x288] sm:$0xff] %v519_v8  ;;  %v282_v8 = vld [vmem:[%s815_s20 + $0x360] sm:$0xff]  ;;  %v413_v13 = vmul.f32 %v810_v0, %v281_v5  ;;  %v543_v18 = vadd.f32 %v820_v1, %v411_v7 }
  0x65   : > { %648 = vst [vmem:[%s834_s25 + $0x290] sm:$0xff] %v520_v11  ;;  %v283_v11 = vld [vmem:[%s815_s20 + $0x368] sm:$0xff]  ;;  %v414_v16 = vmul.f32 %v810_v0, %v282_v8  ;;  %v544_v21 = vadd.f32 %v820_v1, %v412_v10 }
  0x66   : > { %649 = vst [vmem:[%s834_s25 + $0x298] sm:$0xff] %v521_v14  ;;  %v284_v14 = vld [vmem:[%s815_s20 + $0x370] sm:$0xff]  ;;  %v415_v19 = vmul.f32 %v810_v0, %v283_v11  ;;  %v545_v24 = vadd.f32 %v820_v1, %v413_v13 }
  0x67   : > { %650 = vst [vmem:[%s834_s25 + $0x2a0] sm:$0xff] %v522_v17  ;;  %v285_v17 = vld [vmem:[%s815_s20 + $0x378] sm:$0xff]  ;;  %v416_v22 = vmul.f32 %v810_v0, %v284_v14  ;;  %v546_v27 = vadd.f32 %v820_v1, %v414_v16 }
  0x68   : > { %651 = vst [vmem:[%s834_s25 + $0x2a8] sm:$0xff] %v523_v20  ;;  %v286_v20 = vld [vmem:[%s815_s20 + $0x380] sm:$0xff]  ;;  %v417_v25 = vmul.f32 %v810_v0, %v285_v17  ;;  %v547_v30 = vadd.f32 %v820_v1, %v415_v19 }
  0x69   : > { %652 = vst [vmem:[%s834_s25 + $0x2b0] sm:$0xff] %v524_v23  ;;  %v287_v23 = vld [vmem:[%s815_s20 + $0x388] sm:$0xff]  ;;  %v418_v28 = vmul.f32 %v810_v0, %v286_v20  ;;  %v548_v33 = vadd.f32 %v820_v1, %v416_v22 }
  0x6a   : > { %653 = vst [vmem:[%s834_s25 + $0x2b8] sm:$0xff] %v525_v26  ;;  %v288_v26 = vld [vmem:[%s815_s20 + $0x390] sm:$0xff]  ;;  %v419_v31 = vmul.f32 %v810_v0, %v287_v23  ;;  %v549_v36 = vadd.f32 %v820_v1, %v417_v25 }
  0x6b   : > { %654 = vst [vmem:[%s834_s25 + $0x2c0] sm:$0xff] %v526_v29  ;;  %v289_v29 = vld [vmem:[%s815_s20 + $0x398] sm:$0xff]  ;;  %v420_v34 = vmul.f32 %v810_v0, %v288_v26  ;;  %v550_v39 = vadd.f32 %v820_v1, %v418_v28 }
  0x6c   : > { %655 = vst [vmem:[%s834_s25 + $0x2c8] sm:$0xff] %v527_v32  ;;  %v290_v32 = vld [vmem:[%s815_s20 + $0x3a0] sm:$0xff]  ;;  %v421_v37 = vmul.f32 %v810_v0, %v289_v29  ;;  %v551_v42 = vadd.f32 %v820_v1, %v419_v31 }
  0x6d   : > { %656 = vst [vmem:[%s834_s25 + $0x2d0] sm:$0xff] %v528_v35  ;;  %v291_v35 = vld [vmem:[%s815_s20 + $0x3a8] sm:$0xff]  ;;  %v422_v40 = vmul.f32 %v810_v0, %v290_v32  ;;  %v552_v45 = vadd.f32 %v820_v1, %v420_v34 }
  0x6e   : > { %657 = vst [vmem:[%s834_s25 + $0x2d8] sm:$0xff] %v529_v38  ;;  %v292_v38 = vld [vmem:[%s815_s20 + $0x3b0] sm:$0xff]  ;;  %v423_v43 = vmul.f32 %v810_v0, %v291_v35  ;;  %v553_v48 = vadd.f32 %v820_v1, %v421_v37 }
  0x6f   : > { %658 = vst [vmem:[%s834_s25 + $0x2e0] sm:$0xff] %v530_v41  ;;  %v293_v41 = vld [vmem:[%s815_s20 + $0x3b8] sm:$0xff]  ;;  %v424_v46 = vmul.f32 %v810_v0, %v292_v38  ;;  %v554_v51 = vadd.f32 %v820_v1, %v422_v40 }
  0x70   : > { %659 = vst [vmem:[%s834_s25 + $0x2e8] sm:$0xff] %v531_v44  ;;  %v294_v44 = vld [vmem:[%s815_s20 + $0x3c0] sm:$0xff]  ;;  %v425_v49 = vmul.f32 %v810_v0, %v293_v41  ;;  %v555_v54 = vadd.f32 %v820_v1, %v423_v43 }
  0x71   : > { %660 = vst [vmem:[%s834_s25 + $0x2f0] sm:$0xff] %v532_v47  ;;  %v295_v47 = vld [vmem:[%s815_s20 + $0x3c8] sm:$0xff]  ;;  %v426_v52 = vmul.f32 %v810_v0, %v294_v44  ;;  %v556_v57 = vadd.f32 %v820_v1, %v424_v46 }
  0x72   : > { %661 = vst [vmem:[%s834_s25 + $0x2f8] sm:$0xff] %v533_v50  ;;  %v296_v50 = vld [vmem:[%s815_s20 + $0x3d0] sm:$0xff]  ;;  %v427_v55 = vmul.f32 %v810_v0, %v295_v47  ;;  %v557_v60 = vadd.f32 %v820_v1, %v425_v49 }
  0x73   : > { %662 = vst [vmem:[%s834_s25 + $0x300] sm:$0xff] %v534_v53  ;;  %v297_v53 = vld [vmem:[%s815_s20 + $0x3d8] sm:$0xff]  ;;  %v428_v58 = vmul.f32 %v810_v0, %v296_v50  ;;  %v558_v63 = vadd.f32 %v820_v1, %v426_v52 }
  0x74   : > { %663 = vst [vmem:[%s834_s25 + $0x308] sm:$0xff] %v535_v56  ;;  %v298_v56 = vld [vmem:[%s815_s20 + $0x3e0] sm:$0xff]  ;;  %v429_v61 = vmul.f32 %v810_v0, %v297_v53  ;;  %v559_v4 = vadd.f32 %v820_v1, %v427_v55 }
  0x75   : > { %664 = vst [vmem:[%s834_s25 + $0x310] sm:$0xff] %v536_v59  ;;  %v299_v59 = vld [vmem:[%s815_s20 + $0x3e8] sm:$0xff]  ;;  %v430_v2 = vmul.f32 %v810_v0, %v298_v56 }
  0x76   : > { %665 = vst [vmem:[%s834_s25 + $0x318] sm:$0xff] %v537_v62  ;;  %v300_v62 = vld [vmem:[%s815_s20 + $0x3f0] sm:$0xff]  ;;  %v431_v5 = vmul.f32 %v810_v0, %v299_v59  ;;  %v561_v8 = vadd.f32 %v820_v1, %v429_v61 }
  0x77   : > { %666 = vst [vmem:[%s834_s25 + $0x320] sm:$0xff] %v538_v3  ;;  %v301_v3 = vld [vmem:[%s815_s20 + $0x3f8] sm:$0xff]  ;;  %v432_v7 = vmul.f32 %v810_v0, %v300_v62  ;;  %v562_v10 = vadd.f32 %v820_v1, %v430_v2 }
  0x78   : > { %667 = vst [vmem:[%s834_s25 + $0x328] sm:$0xff] %v539_v6  ;;  %v560_v6 = vadd.f32 %v820_v1, %v428_v58  ;;  %v563_v11 = vadd.f32 %v820_v1, %v431_v5 }
  0x79   : > { %668 = vst [vmem:[%s834_s25 + $0x330] sm:$0xff] %v540_v9  ;;  %v433_v9 = vmul.f32 %v810_v0, %v301_v3 }
  0x7a   : > { %669 = vst [vmem:[%s834_s25 + $0x338] sm:$0xff] %v541_v12  ;;  %v564_v12 = vadd.f32 %v820_v1, %v432_v7 }
  0x7b   : > { %670 = vst [vmem:[%s834_s25 + $0x340] sm:$0xff] %v542_v15  ;;  %v565_v13 = vadd.f32 %v820_v1, %v433_v9 }
  0x7c   : > { %671 = vst [vmem:[%s834_s25 + $0x348] sm:$0xff] %v543_v18 }
  0x7d   : > { %672 = vst [vmem:[%s834_s25 + $0x350] sm:$0xff] %v544_v21 }
  0x7e   : > { %673 = vst [vmem:[%s834_s25 + $0x358] sm:$0xff] %v545_v24 }
  0x7f   : > { %674 = vst [vmem:[%s834_s25 + $0x360] sm:$0xff] %v546_v27 }
  0x80   : > { %675 = vst [vmem:[%s834_s25 + $0x368] sm:$0xff] %v547_v30 }
  0x81   : > { %676 = vst [vmem:[%s834_s25 + $0x370] sm:$0xff] %v548_v33 }
  0x82   : > { %677 = vst [vmem:[%s834_s25 + $0x378] sm:$0xff] %v549_v36 }
  0x83   : > { %678 = vst [vmem:[%s834_s25 + $0x380] sm:$0xff] %v550_v39 }
  0x84   : > { %679 = vst [vmem:[%s834_s25 + $0x388] sm:$0xff] %v551_v42 }
  0x85   : > { %680 = vst [vmem:[%s834_s25 + $0x390] sm:$0xff] %v552_v45 }
  0x86   : > { %681 = vst [vmem:[%s834_s25 + $0x398] sm:$0xff] %v553_v48 }
  0x87   : > { %682 = vst [vmem:[%s834_s25 + $0x3a0] sm:$0xff] %v554_v51 }
  0x88   : > { %683 = vst [vmem:[%s834_s25 + $0x3a8] sm:$0xff] %v555_v54 }
  0x89   : > { %684 = vst [vmem:[%s834_s25 + $0x3b0] sm:$0xff] %v556_v57 }
  0x8a   : > { %685 = vst [vmem:[%s834_s25 + $0x3b8] sm:$0xff] %v557_v60 }
  0x8b   : > { %686 = vst [vmem:[%s834_s25 + $0x3c0] sm:$0xff] %v558_v63 }
  0x8c   : > { %687 = vst [vmem:[%s834_s25 + $0x3c8] sm:$0xff] %v559_v4 }
  0x8d   : > { %688 = vst [vmem:[%s834_s25 + $0x3d0] sm:$0xff] %v560_v6 }
  0x8e   : > { %689 = vst [vmem:[%s834_s25 + $0x3d8] sm:$0xff] %v561_v8 }
  0x8f   : > { %690 = vst [vmem:[%s834_s25 + $0x3e0] sm:$0xff] %v562_v10 }
  0x90   : > { %691 = vst [vmem:[%s834_s25 + $0x3e8] sm:$0xff] %v563_v11 }
  0x91   : > { %692 = vst [vmem:[%s834_s25 + $0x3f0] sm:$0xff] %v564_v12 }
  0x92   : > { %693 = vst [vmem:[%s834_s25 + $0x3f8] sm:$0xff] %v565_v13 }
  0x93 PF: > { %s13_s12 = sadd.s32 1, %s777_s12  }
  0x94   : > { %p10_p4 = scmp.ge.s32.totalorder %s13_s12, 4  }
  0x96   :  { %12 = sbr.rel (!%p10_p4) target bundleno = 1 (0x1), region = 62 }

</bundles_post_ra>
